<compile_context>
chip_gen: v5e
topology: v5e:2x2
jax: 0.10.0
libtpu: 0.0.40
codegen_flags: <defaults>
</compile_context>

<pallas_src>
import jax
import jax.numpy as jnp
from jax.experimental import pallas as pl
from jax.experimental.pallas import tpu as pltpu


# ------------------------------ fused kernel ---------------------------------

def _biin_fused_kernel(x1_ref, x2_ref, enc_w_ref, enc_b_ref,
                       conv_w_ref, conv_b_ref, cls_wt_ref, cls_b_ref, o_ref):
    """Whole BIIN forward for `spb` batch samples, entirely VMEM-resident.

    x1_ref     : (spb, L, 768)   bf16  -- bert features of sentence 1
    x2_ref     : (spb, L, 768)   bf16  -- bert features of sentence 2
    enc_w_ref  : (768, 2H)       bf16
    enc_b_ref  : (1, 2H)         f32
    conv_w_ref : (9, 2H, Cout)   bf16  -- 3x3 conv weights, tap-major (dy*3+dx)
    conv_b_ref : (1, Cout)       f32
    cls_wt_ref : (ncls, Cout)    f32   -- classifier weight, transposed
    cls_b_ref  : (1, ncls)       f32
    o_ref      : (1, spb, ncls)  f32
    """
    spb, L, D = x1_ref.shape
    C = enc_w_ref.shape[1]                               # 2 * hidden
    Cout = conv_w_ref.shape[2]
    M = spb * L                                          # rows per sentence

    # --- encoder: both sentences of all samples in ONE bf16 MXU matmul -------
    x = jnp.concatenate([x1_ref[...].reshape(M, D),
                         x2_ref[...].reshape(M, D)], axis=0)        # (2M, D) bf16
    enc = jnp.dot(x, enc_w_ref[...],
                  preferred_element_type=jnp.float32)                # (2M, C) f32
    enc = jnp.tanh(enc + enc_b_ref[...])
    e1 = enc[:M]                                                     # (M, C)
    e2 = enc[M:]                                                     # (M, C)

    # --- zero-padded conv halo via XLU roll + VPU mask (no MXU, no shift input)
    # s[d][s*L + i] = e[s*L + i + d - 1] within sample s, 0 outside [0, L).
    row = jax.lax.broadcasted_iota(jnp.int32, (M, C), 0) % L
    first_row = row == 0
    last_row = row == (L - 1)

    def shifted(e):
        down = jnp.where(first_row, 0.0, pltpu.roll(e, shift=1, axis=0))
        up = jnp.where(last_row, 0.0, pltpu.roll(e, shift=M - 1, axis=0))
        return (down, e, up)                              # d = 0, 1, 2

    s1 = shifted(e1)
    s2 = shifted(e2)

    # --- interaction regenerated per tap, conv accumulated per tap -----------
    # No im2col patch matrix: 9 bf16 matmuls (spb*L*L, C) @ (C, Cout) summed
    # into a single f32 accumulator.
    acc = jnp.zeros((spb * L * L, Cout), jnp.float32)
    for dy in range(3):
        a = s1[dy].reshape(spb, L, 1, C)
        for dx in range(3):
            b = s2[dx].reshape(spb, 1, L, C)
            tap = (a * b).reshape(spb * L * L, C).astype(jnp.bfloat16)
            acc = acc + jnp.dot(tap, conv_w_ref[3 * dy + dx],
                                preferred_element_type=jnp.float32)
    conv = jnp.maximum(acc + conv_b_ref[...], 0.0)        # bias + ReLU

    # --- global max pool (per sample) + VPU classifier epilogue --------------
    pooled = jnp.max(conv.reshape(spb, L * L, Cout), axis=1)         # (spb, Cout)
    prod = pooled[:, None, :] * cls_wt_ref[...][None, :, :]          # (spb, ncls, Cout)
    logits = jnp.sum(prod, axis=-1) + cls_b_ref[...]                 # (spb, ncls)
    o_ref[0] = logits


def biin_fused(bert_1, bert_2, params, *, samples_per_block=None):
    """Fused encoder -> interaction -> conv/ReLU/GMP -> classifier. Returns logits."""
    B, L, D = bert_1.shape
    two_h = params["enc_w"].shape[1]
    conv_ch = params["conv_w"].shape[-1]
    n_cls = params["cls_w"].shape[-1]

    if samples_per_block is None:
        # Default: 2 parallel grid blocks (keeps both v7x TensorCores busy,
        # no-op on 1-TC v5e/v6e); the batch inside each block is fused into
        # the matmul M dimension.  Set samples_per_block=B on 1-TC chips to
        # collapse to one fully fused grid step.
        samples_per_block = B // 2 if (B >= 2 and B % 2 == 0) else B
    spb = samples_per_block
    assert B % spb == 0
    num_blocks = B // spb

    # bf16 MXU feeds; biases / accumulation / tanh stay f32.
    x1 = bert_1.astype(jnp.bfloat16)
    x2 = bert_2.astype(jnp.bfloat16)
    enc_w = params["enc_w"].astype(jnp.bfloat16)
    enc_b = params["enc_b"].reshape(1, two_h).astype(jnp.float32)
    # Tap-major (dy, dx) layout matches the kernel's accumulation order.
    # NOTE: PyTorch Conv2d weights are (Cout, Cin, kH, kW); importing real
    # weights requires a transpose to (kH, kW, Cin, Cout) first.
    conv_w = params["conv_w"].reshape(9, two_h, conv_ch).astype(jnp.bfloat16)
    conv_b = params["conv_b"].reshape(1, conv_ch).astype(jnp.float32)
    cls_wt = params["cls_w"].T.astype(jnp.float32)        # (n_cls, conv_ch)
    cls_b = params["cls_b"].reshape(1, n_cls).astype(jnp.float32)

    out = pl.pallas_call(
        _biin_fused_kernel,
        out_shape=jax.ShapeDtypeStruct((num_blocks, spb, n_cls), jnp.float32),
        grid=(num_blocks,),
        in_specs=[
            pl.BlockSpec((spb, L, D), lambda b: (b, 0, 0)),
            pl.BlockSpec((spb, L, D), lambda b: (b, 0, 0)),
            pl.BlockSpec((D, two_h), lambda b: (0, 0)),
            pl.BlockSpec((1, two_h), lambda b: (0, 0)),
            pl.BlockSpec((9, two_h, conv_ch), lambda b: (0, 0, 0)),
            pl.BlockSpec((1, conv_ch), lambda b: (0, 0)),
            pl.BlockSpec((n_cls, conv_ch), lambda b: (0, 0)),
            pl.BlockSpec((1, n_cls), lambda b: (0, 0)),
        ],
        out_specs=pl.BlockSpec((1, spb, n_cls), lambda b: (b, 0, 0)),
        compiler_params=pltpu.CompilerParams(
            dimension_semantics=("parallel",)),            # 2x on v7x (2 TCs)
    )(x1, x2, enc_w, enc_b, conv_w, conv_b, cls_wt, cls_b)
    return out.reshape(B, n_cls)


# -------------------------- parameters & forward ------------------------------

def init_params(key, vocab=50, seq_len=8, bert_dim=768, hidden=32,
                conv_ch=32, n_classes=2):
    ks = jax.random.split(key, 5)
    s = 0.02
    return {
        "tok_emb": jax.random.normal(ks[0], (vocab, bert_dim), jnp.float32) * s,
        "pos_emb": jax.random.normal(ks[1], (seq_len, bert_dim), jnp.float32) * s,
        "enc_w":  jax.random.normal(ks[2], (bert_dim, 2 * hidden), jnp.float32) * s,
        "enc_b":  jnp.zeros((2 * hidden,), jnp.float32),
        "conv_w": jax.random.normal(ks[3], (3, 3, 2 * hidden, conv_ch), jnp.float32) * s,
        "conv_b": jnp.zeros((conv_ch,), jnp.float32),
        "cls_w":  jax.random.normal(ks[4], (conv_ch, n_classes), jnp.float32) * s,
        "cls_b":  jnp.zeros((n_classes,), jnp.float32),
    }


def bert_feature(params, tokens):
    # TODO(synk): BertFeature (a full BERT encoder) is approximated by a
    # token + position embedding lookup; `self._input(q)[1]` is taken to be the
    # sequence output [B, L, 768].  Lookup is glue, kept in plain JAX.
    return params["tok_emb"][tokens] + params["pos_emb"][None, :, :]


def biin_forward(params, q1, q2):
    # self._input(...)[1] followed by Dropout(p=0.15) (eval mode => identity).
    # TODO(synk): the original Encoding is presumably a BiLSTM; its recurrence
    # is replaced by an equivalent-shape per-token dense + tanh inside the
    # fused kernel.  FeatureExtractor internals are unspecified; the fused
    # 3x3-conv + ReLU + global-max-pool + Linear head matches its declared
    # input-channel count (hidden_size * 2).
    bert_1 = bert_feature(params, q1)
    bert_2 = bert_feature(params, q2)
    return biin_fused(bert_1, bert_2, params)


if __name__ == "__main__":
    key = jax.random.PRNGKey(0)
    pkey, dkey1, dkey2 = jax.random.split(key, 3)
    B, L, vocab = 2, 8, 50
    params = init_params(pkey, vocab=vocab, seq_len=L, bert_dim=768,
                         hidden=32, conv_ch=32, n_classes=2)
    q1 = jax.random.randint(dkey1, (B, L), 0, vocab, dtype=jnp.int32)
    q2 = jax.random.randint(dkey2, (B, L), 0, vocab, dtype=jnp.int32)

    out = jax.jit(biin_forward)(params, q1, q2)
    jax.block_until_ready(out)
    assert out.shape == (B, 2) and out.dtype == jnp.float32
    print("KERNEL_OK")
</pallas_src>

<mosaic_0001>
module attributes {stable_mosaic.version = 11 : i64} {
  func.func @_biin_fused_kernel(%arg0: i32, %arg1: memref<1x8x768xbf16, #tpu.memory_space<vmem>>, %arg2: memref<1x8x768xbf16, #tpu.memory_space<vmem>>, %arg3: memref<768x64xbf16, #tpu.memory_space<vmem>>, %arg4: memref<1x64xf32, #tpu.memory_space<vmem>>, %arg5: memref<9x64x32xbf16, #tpu.memory_space<vmem>>, %arg6: memref<1x32xf32, #tpu.memory_space<vmem>>, %arg7: memref<2x32xf32, #tpu.memory_space<vmem>>, %arg8: memref<1x2xf32, #tpu.memory_space<vmem>>, %arg9: memref<1x1x2xf32, #tpu.memory_space<vmem>>) attributes {dimension_semantics = [#tpu.dimension_semantics<parallel>], iteration_bounds = array<i64: 2>, scalar_prefetch = 0 : i64, scratch_operands = 0 : i64, tpu.core_type = #tpu.core_type<tc>, window_params = [{transform_indices = @transform_0, window_bounds = array<i64: 1, 8, 768>}, {transform_indices = @transform_1, window_bounds = array<i64: 1, 8, 768>}, {pipeline_mode = #tpu.pipeline_mode<synchronous>, transform_indices = @transform_2, window_bounds = array<i64: 768, 64>}, {pipeline_mode = #tpu.pipeline_mode<synchronous>, transform_indices = @transform_3, window_bounds = array<i64: 1, 64>}, {pipeline_mode = #tpu.pipeline_mode<synchronous>, transform_indices = @transform_4, window_bounds = array<i64: 9, 64, 32>}, {pipeline_mode = #tpu.pipeline_mode<synchronous>, transform_indices = @transform_5, window_bounds = array<i64: 1, 32>}, {pipeline_mode = #tpu.pipeline_mode<synchronous>, transform_indices = @transform_6, window_bounds = array<i64: 2, 32>}, {pipeline_mode = #tpu.pipeline_mode<synchronous>, transform_indices = @transform_7, window_bounds = array<i64: 1, 2>}, {transform_indices = @transform_8, window_bounds = array<i64: 1, 1, 2>}]} {
    %c0 = arith.constant 0 : index
    %c0_0 = arith.constant 0 : index
    %c0_1 = arith.constant 0 : index
    %0 = vector.load %arg1[%c0, %c0_0, %c0_1] : memref<1x8x768xbf16, #tpu.memory_space<vmem>>, vector<1x8x768xbf16>
    %1 = vector.shape_cast %0 : vector<1x8x768xbf16> to vector<8x768xbf16>
    %c0_2 = arith.constant 0 : index
    %c0_3 = arith.constant 0 : index
    %c0_4 = arith.constant 0 : index
    %2 = vector.load %arg2[%c0_2, %c0_3, %c0_4] : memref<1x8x768xbf16, #tpu.memory_space<vmem>>, vector<1x8x768xbf16>
    %3 = vector.shape_cast %2 : vector<1x8x768xbf16> to vector<8x768xbf16>
    %4 = tpu.concatenate %1, %3 in 0 : vector<8x768xbf16>, vector<8x768xbf16> -> vector<16x768xbf16>
    %c0_5 = arith.constant 0 : index
    %c0_6 = arith.constant 0 : index
    %5 = vector.load %arg3[%c0_5, %c0_6] : memref<768x64xbf16, #tpu.memory_space<vmem>>, vector<768x64xbf16>
    %cst = arith.constant dense<0.000000e+00> : vector<16x64xf32>
    %6 = tpu.matmul %4, %5, %cst {dimension_numbers = #tpu.dot_dimension_numbers<[1], [0], [0], [1], [0, 0, 1, 1], [], []>} : vector<16x768xbf16>, vector<768x64xbf16>, vector<16x64xf32> -> vector<16x64xf32>
    %c0_7 = arith.constant 0 : index
    %c0_8 = arith.constant 0 : index
    %7 = vector.load %arg4[%c0_7, %c0_8] : memref<1x64xf32, #tpu.memory_space<vmem>>, vector<1x64xf32>
    %8 = vector.broadcast %7 : vector<1x64xf32> to vector<16x64xf32>
    %9 = arith.addf %6, %8 : vector<16x64xf32>
    %10 = math.tanh %9 : vector<16x64xf32>
    %11 = vector.extract_strided_slice %10 {offsets = [0, 0], sizes = [8, 64], strides = [1, 1]} : vector<16x64xf32> to vector<8x64xf32>
    %12 = vector.extract_strided_slice %10 {offsets = [8, 0], sizes = [8, 64], strides = [1, 1]} : vector<16x64xf32> to vector<8x64xf32>
    %13 = tpu.iota {dimensions = array<i32: 0>} : vector<8x64xi32>
    %c8_i32 = arith.constant 8 : i32
    %c0_i32 = arith.constant 0 : i32
    %14 = arith.cmpi eq, %c8_i32, %c0_i32 : i32
    %c1_i32 = arith.constant 1 : i32
    %15 = arith.select %14, %c1_i32, %c8_i32 : i32
    %16 = vector.broadcast %15 : i32 to vector<8x64xi32>
    %17 = arith.remsi %13, %16 : vector<8x64xi32>
    %c0_i32_9 = arith.constant 0 : i32
    %18 = vector.broadcast %c0_i32_9 : i32 to vector<8x64xi32>
    %19 = arith.cmpi ne, %17, %18 : vector<8x64xi32>
    %c0_i32_10 = arith.constant 0 : i32
    %20 = vector.broadcast %c0_i32_10 : i32 to vector<8x64xi32>
    %21 = arith.cmpi slt, %17, %20 : vector<8x64xi32>
    %c0_i32_11 = arith.constant 0 : i32
    %22 = arith.cmpi slt, %15, %c0_i32_11 : i32
    %23 = vector.broadcast %22 : i1 to vector<8x64xi1>
    %24 = vector.broadcast %23 : vector<8x64xi1> to vector<8x64xi1>
    %25 = arith.xori %21, %24 : vector<8x64xi1>
    %26 = arith.andi %25, %19 : vector<8x64xi1>
    %27 = vector.broadcast %15 : i32 to vector<8x64xi32>
    %28 = arith.addi %17, %27 : vector<8x64xi32>
    %29 = arith.select %26, %28, %17 : vector<8x64xi1>, vector<8x64xi32>
    %c0_i32_12 = arith.constant 0 : i32
    %30 = vector.broadcast %c0_i32_12 : i32 to vector<8x64xi32>
    %31 = arith.cmpi eq, %29, %30 : vector<8x64xi32>
    %c7_i32 = arith.constant 7 : i32
    %32 = vector.broadcast %c7_i32 : i32 to vector<8x64xi32>
    %33 = arith.cmpi eq, %29, %32 : vector<8x64xi32>
    %c1_i32_13 = arith.constant 1 : i32
    %34 = tpu.dynamic_rotate %11 by %c1_i32_13 dim 0 : vector<8x64xf32>, i32 -> vector<8x64xf32>
    %cst_14 = arith.constant 0.000000e+00 : f32
    %35 = vector.broadcast %cst_14 : f32 to vector<8x64xf32>
    %36 = arith.select %31, %35, %34 : vector<8x64xi1>, vector<8x64xf32>
    %c7_i32_15 = arith.constant 7 : i32
    %37 = tpu.dynamic_rotate %11 by %c7_i32_15 dim 0 : vector<8x64xf32>, i32 -> vector<8x64xf32>
    %cst_16 = arith.constant 0.000000e+00 : f32
    %38 = vector.broadcast %cst_16 : f32 to vector<8x64xf32>
    %39 = arith.select %33, %38, %37 : vector<8x64xi1>, vector<8x64xf32>
    %c1_i32_17 = arith.constant 1 : i32
    %40 = tpu.dynamic_rotate %12 by %c1_i32_17 dim 0 : vector<8x64xf32>, i32 -> vector<8x64xf32>
    %cst_18 = arith.constant 0.000000e+00 : f32
    %41 = vector.broadcast %cst_18 : f32 to vector<8x64xf32>
    %42 = arith.select %31, %41, %40 : vector<8x64xi1>, vector<8x64xf32>
    %c7_i32_19 = arith.constant 7 : i32
    %43 = tpu.dynamic_rotate %12 by %c7_i32_19 dim 0 : vector<8x64xf32>, i32 -> vector<8x64xf32>
    %cst_20 = arith.constant 0.000000e+00 : f32
    %44 = vector.broadcast %cst_20 : f32 to vector<8x64xf32>
    %45 = arith.select %33, %44, %43 : vector<8x64xi1>, vector<8x64xf32>
    %cst_21 = arith.constant 0.000000e+00 : f32
    %46 = vector.broadcast %cst_21 : f32 to vector<64x32xf32>
    %47 = vector.shape_cast %36 : vector<8x64xf32> to vector<1x8x1x64xf32>
    %48 = vector.shape_cast %42 : vector<8x64xf32> to vector<1x1x8x64xf32>
    %49 = vector.broadcast %47 : vector<1x8x1x64xf32> to vector<1x8x8x64xf32>
    %50 = vector.broadcast %48 : vector<1x1x8x64xf32> to vector<1x8x8x64xf32>
    %51 = arith.mulf %49, %50 : vector<1x8x8x64xf32>
    %52 = vector.shape_cast %51 : vector<1x8x8x64xf32> to vector<64x64xf32>
    %53 = arith.truncf %52 : vector<64x64xf32> to vector<64x64xbf16>
    %c0_22 = arith.constant 0 : index
    %c0_23 = arith.constant 0 : index
    %c0_24 = arith.constant 0 : index
    %54 = vector.load %arg5[%c0_22, %c0_23, %c0_24] : memref<9x64x32xbf16, #tpu.memory_space<vmem>>, vector<1x64x32xbf16>
    %55 = vector.shape_cast %54 : vector<1x64x32xbf16> to vector<64x32xbf16>
    %cst_25 = arith.constant dense<0.000000e+00> : vector<64x32xf32>
    %56 = tpu.matmul %53, %55, %cst_25 {dimension_numbers = #tpu.dot_dimension_numbers<[1], [0], [0], [1], [0, 0, 1, 1], [], []>} : vector<64x64xbf16>, vector<64x32xbf16>, vector<64x32xf32> -> vector<64x32xf32>
    %57 = arith.addf %46, %56 : vector<64x32xf32>
    %58 = vector.shape_cast %12 : vector<8x64xf32> to vector<1x1x8x64xf32>
    %59 = vector.broadcast %47 : vector<1x8x1x64xf32> to vector<1x8x8x64xf32>
    %60 = vector.broadcast %58 : vector<1x1x8x64xf32> to vector<1x8x8x64xf32>
    %61 = arith.mulf %59, %60 : vector<1x8x8x64xf32>
    %62 = vector.shape_cast %61 : vector<1x8x8x64xf32> to vector<64x64xf32>
    %63 = arith.truncf %62 : vector<64x64xf32> to vector<64x64xbf16>
    %c1 = arith.constant 1 : index
    %c0_26 = arith.constant 0 : index
    %c0_27 = arith.constant 0 : index
    %64 = vector.load %arg5[%c1, %c0_26, %c0_27] : memref<9x64x32xbf16, #tpu.memory_space<vmem>>, vector<1x64x32xbf16>
    %65 = vector.shape_cast %64 : vector<1x64x32xbf16> to vector<64x32xbf16>
    %cst_28 = arith.constant dense<0.000000e+00> : vector<64x32xf32>
    %66 = tpu.matmul %63, %65, %cst_28 {dimension_numbers = #tpu.dot_dimension_numbers<[1], [0], [0], [1], [0, 0, 1, 1], [], []>} : vector<64x64xbf16>, vector<64x32xbf16>, vector<64x32xf32> -> vector<64x32xf32>
    %67 = arith.addf %57, %66 : vector<64x32xf32>
    %68 = vector.shape_cast %45 : vector<8x64xf32> to vector<1x1x8x64xf32>
    %69 = vector.broadcast %47 : vector<1x8x1x64xf32> to vector<1x8x8x64xf32>
    %70 = vector.broadcast %68 : vector<1x1x8x64xf32> to vector<1x8x8x64xf32>
    %71 = arith.mulf %69, %70 : vector<1x8x8x64xf32>
    %72 = vector.shape_cast %71 : vector<1x8x8x64xf32> to vector<64x64xf32>
    %73 = arith.truncf %72 : vector<64x64xf32> to vector<64x64xbf16>
    %c2 = arith.constant 2 : index
    %c0_29 = arith.constant 0 : index
    %c0_30 = arith.constant 0 : index
    %74 = vector.load %arg5[%c2, %c0_29, %c0_30] : memref<9x64x32xbf16, #tpu.memory_space<vmem>>, vector<1x64x32xbf16>
    %75 = vector.shape_cast %74 : vector<1x64x32xbf16> to vector<64x32xbf16>
    %cst_31 = arith.constant dense<0.000000e+00> : vector<64x32xf32>
    %76 = tpu.matmul %73, %75, %cst_31 {dimension_numbers = #tpu.dot_dimension_numbers<[1], [0], [0], [1], [0, 0, 1, 1], [], []>} : vector<64x64xbf16>, vector<64x32xbf16>, vector<64x32xf32> -> vector<64x32xf32>
    %77 = arith.addf %67, %76 : vector<64x32xf32>
    %78 = vector.shape_cast %11 : vector<8x64xf32> to vector<1x8x1x64xf32>
    %79 = vector.shape_cast %42 : vector<8x64xf32> to vector<1x1x8x64xf32>
    %80 = vector.broadcast %78 : vector<1x8x1x64xf32> to vector<1x8x8x64xf32>
    %81 = vector.broadcast %79 : vector<1x1x8x64xf32> to vector<1x8x8x64xf32>
    %82 = arith.mulf %80, %81 : vector<1x8x8x64xf32>
    %83 = vector.shape_cast %82 : vector<1x8x8x64xf32> to vector<64x64xf32>
    %84 = arith.truncf %83 : vector<64x64xf32> to vector<64x64xbf16>
    %c3 = arith.constant 3 : index
    %c0_32 = arith.constant 0 : index
    %c0_33 = arith.constant 0 : index
    %85 = vector.load %arg5[%c3, %c0_32, %c0_33] : memref<9x64x32xbf16, #tpu.memory_space<vmem>>, vector<1x64x32xbf16>
    %86 = vector.shape_cast %85 : vector<1x64x32xbf16> to vector<64x32xbf16>
    %cst_34 = arith.constant dense<0.000000e+00> : vector<64x32xf32>
    %87 = tpu.matmul %84, %86, %cst_34 {dimension_numbers = #tpu.dot_dimension_numbers<[1], [0], [0], [1], [0, 0, 1, 1], [], []>} : vector<64x64xbf16>, vector<64x32xbf16>, vector<64x32xf32> -> vector<64x32xf32>
    %88 = arith.addf %77, %87 : vector<64x32xf32>
    %89 = vector.shape_cast %12 : vector<8x64xf32> to vector<1x1x8x64xf32>
    %90 = vector.broadcast %78 : vector<1x8x1x64xf32> to vector<1x8x8x64xf32>
    %91 = vector.broadcast %89 : vector<1x1x8x64xf32> to vector<1x8x8x64xf32>
    %92 = arith.mulf %90, %91 : vector<1x8x8x64xf32>
    %93 = vector.shape_cast %92 : vector<1x8x8x64xf32> to vector<64x64xf32>
    %94 = arith.truncf %93 : vector<64x64xf32> to vector<64x64xbf16>
    %c4 = arith.constant 4 : index
    %c0_35 = arith.constant 0 : index
    %c0_36 = arith.constant 0 : index
    %95 = vector.load %arg5[%c4, %c0_35, %c0_36] : memref<9x64x32xbf16, #tpu.memory_space<vmem>>, vector<1x64x32xbf16>
    %96 = vector.shape_cast %95 : vector<1x64x32xbf16> to vector<64x32xbf16>
    %cst_37 = arith.constant dense<0.000000e+00> : vector<64x32xf32>
    %97 = tpu.matmul %94, %96, %cst_37 {dimension_numbers = #tpu.dot_dimension_numbers<[1], [0], [0], [1], [0, 0, 1, 1], [], []>} : vector<64x64xbf16>, vector<64x32xbf16>, vector<64x32xf32> -> vector<64x32xf32>
    %98 = arith.addf %88, %97 : vector<64x32xf32>
    %99 = vector.shape_cast %45 : vector<8x64xf32> to vector<1x1x8x64xf32>
    %100 = vector.broadcast %78 : vector<1x8x1x64xf32> to vector<1x8x8x64xf32>
    %101 = vector.broadcast %99 : vector<1x1x8x64xf32> to vector<1x8x8x64xf32>
    %102 = arith.mulf %100, %101 : vector<1x8x8x64xf32>
    %103 = vector.shape_cast %102 : vector<1x8x8x64xf32> to vector<64x64xf32>
    %104 = arith.truncf %103 : vector<64x64xf32> to vector<64x64xbf16>
    %c5 = arith.constant 5 : index
    %c0_38 = arith.constant 0 : index
    %c0_39 = arith.constant 0 : index
    %105 = vector.load %arg5[%c5, %c0_38, %c0_39] : memref<9x64x32xbf16, #tpu.memory_space<vmem>>, vector<1x64x32xbf16>
    %106 = vector.shape_cast %105 : vector<1x64x32xbf16> to vector<64x32xbf16>
    %cst_40 = arith.constant dense<0.000000e+00> : vector<64x32xf32>
    %107 = tpu.matmul %104, %106, %cst_40 {dimension_numbers = #tpu.dot_dimension_numbers<[1], [0], [0], [1], [0, 0, 1, 1], [], []>} : vector<64x64xbf16>, vector<64x32xbf16>, vector<64x32xf32> -> vector<64x32xf32>
    %108 = arith.addf %98, %107 : vector<64x32xf32>
    %109 = vector.shape_cast %39 : vector<8x64xf32> to vector<1x8x1x64xf32>
    %110 = vector.shape_cast %42 : vector<8x64xf32> to vector<1x1x8x64xf32>
    %111 = vector.broadcast %109 : vector<1x8x1x64xf32> to vector<1x8x8x64xf32>
    %112 = vector.broadcast %110 : vector<1x1x8x64xf32> to vector<1x8x8x64xf32>
    %113 = arith.mulf %111, %112 : vector<1x8x8x64xf32>
    %114 = vector.shape_cast %113 : vector<1x8x8x64xf32> to vector<64x64xf32>
    %115 = arith.truncf %114 : vector<64x64xf32> to vector<64x64xbf16>
    %c6 = arith.constant 6 : index
    %c0_41 = arith.constant 0 : index
    %c0_42 = arith.constant 0 : index
    %116 = vector.load %arg5[%c6, %c0_41, %c0_42] : memref<9x64x32xbf16, #tpu.memory_space<vmem>>, vector<1x64x32xbf16>
    %117 = vector.shape_cast %116 : vector<1x64x32xbf16> to vector<64x32xbf16>
    %cst_43 = arith.constant dense<0.000000e+00> : vector<64x32xf32>
    %118 = tpu.matmul %115, %117, %cst_43 {dimension_numbers = #tpu.dot_dimension_numbers<[1], [0], [0], [1], [0, 0, 1, 1], [], []>} : vector<64x64xbf16>, vector<64x32xbf16>, vector<64x32xf32> -> vector<64x32xf32>
    %119 = arith.addf %108, %118 : vector<64x32xf32>
    %120 = vector.shape_cast %12 : vector<8x64xf32> to vector<1x1x8x64xf32>
    %121 = vector.broadcast %109 : vector<1x8x1x64xf32> to vector<1x8x8x64xf32>
    %122 = vector.broadcast %120 : vector<1x1x8x64xf32> to vector<1x8x8x64xf32>
    %123 = arith.mulf %121, %122 : vector<1x8x8x64xf32>
    %124 = vector.shape_cast %123 : vector<1x8x8x64xf32> to vector<64x64xf32>
    %125 = arith.truncf %124 : vector<64x64xf32> to vector<64x64xbf16>
    %c7 = arith.constant 7 : index
    %c0_44 = arith.constant 0 : index
    %c0_45 = arith.constant 0 : index
    %126 = vector.load %arg5[%c7, %c0_44, %c0_45] : memref<9x64x32xbf16, #tpu.memory_space<vmem>>, vector<1x64x32xbf16>
    %127 = vector.shape_cast %126 : vector<1x64x32xbf16> to vector<64x32xbf16>
    %cst_46 = arith.constant dense<0.000000e+00> : vector<64x32xf32>
    %128 = tpu.matmul %125, %127, %cst_46 {dimension_numbers = #tpu.dot_dimension_numbers<[1], [0], [0], [1], [0, 0, 1, 1], [], []>} : vector<64x64xbf16>, vector<64x32xbf16>, vector<64x32xf32> -> vector<64x32xf32>
    %129 = arith.addf %119, %128 : vector<64x32xf32>
    %130 = vector.shape_cast %45 : vector<8x64xf32> to vector<1x1x8x64xf32>
    %131 = vector.broadcast %109 : vector<1x8x1x64xf32> to vector<1x8x8x64xf32>
    %132 = vector.broadcast %130 : vector<1x1x8x64xf32> to vector<1x8x8x64xf32>
    %133 = arith.mulf %131, %132 : vector<1x8x8x64xf32>
    %134 = vector.shape_cast %133 : vector<1x8x8x64xf32> to vector<64x64xf32>
    %135 = arith.truncf %134 : vector<64x64xf32> to vector<64x64xbf16>
    %c8 = arith.constant 8 : index
    %c0_47 = arith.constant 0 : index
    %c0_48 = arith.constant 0 : index
    %136 = vector.load %arg5[%c8, %c0_47, %c0_48] : memref<9x64x32xbf16, #tpu.memory_space<vmem>>, vector<1x64x32xbf16>
    %137 = vector.shape_cast %136 : vector<1x64x32xbf16> to vector<64x32xbf16>
    %cst_49 = arith.constant dense<0.000000e+00> : vector<64x32xf32>
    %138 = tpu.matmul %135, %137, %cst_49 {dimension_numbers = #tpu.dot_dimension_numbers<[1], [0], [0], [1], [0, 0, 1, 1], [], []>} : vector<64x64xbf16>, vector<64x32xbf16>, vector<64x32xf32> -> vector<64x32xf32>
    %139 = arith.addf %129, %138 : vector<64x32xf32>
    %c0_50 = arith.constant 0 : index
    %c0_51 = arith.constant 0 : index
    %140 = vector.load %arg6[%c0_50, %c0_51] : memref<1x32xf32, #tpu.memory_space<vmem>>, vector<1x32xf32>
    %141 = vector.broadcast %140 : vector<1x32xf32> to vector<64x32xf32>
    %142 = arith.addf %139, %141 : vector<64x32xf32>
    %cst_52 = arith.constant 0.000000e+00 : f32
    %143 = vector.broadcast %cst_52 : f32 to vector<64x32xf32>
    %144 = arith.maximumf %142, %143 : vector<64x32xf32>
    %145 = vector.shape_cast %144 : vector<64x32xf32> to vector<1x64x32xf32>
    %cst_53 = arith.constant dense<0xFF800000> : vector<1x32xf32>
    %146 = vector.multi_reduction <maximumf>, %145, %cst_53 [1] : vector<1x64x32xf32> to vector<1x32xf32>
    %147 = vector.shape_cast %146 : vector<1x32xf32> to vector<1x1x32xf32>
    %c0_54 = arith.constant 0 : index
    %c0_55 = arith.constant 0 : index
    %148 = vector.load %arg7[%c0_54, %c0_55] : memref<2x32xf32, #tpu.memory_space<vmem>>, vector<2x32xf32>
    %149 = vector.shape_cast %148 : vector<2x32xf32> to vector<1x2x32xf32>
    %150 = vector.broadcast %147 : vector<1x1x32xf32> to vector<1x2x32xf32>
    %151 = arith.mulf %150, %149 : vector<1x2x32xf32>
    %cst_56 = arith.constant dense<0.000000e+00> : vector<1x2xf32>
    %152 = vector.multi_reduction <add>, %151, %cst_56 [2] : vector<1x2x32xf32> to vector<1x2xf32>
    %c0_57 = arith.constant 0 : index
    %c0_58 = arith.constant 0 : index
    %153 = vector.load %arg8[%c0_57, %c0_58] : memref<1x2xf32, #tpu.memory_space<vmem>>, vector<1x2xf32>
    %154 = arith.addf %152, %153 : vector<1x2xf32>
    %c0_59 = arith.constant 0 : index
    %c0_60 = arith.constant 0 : index
    %c0_61 = arith.constant 0 : index
    %155 = vector.load %arg9[%c0_59, %c0_60, %c0_61] : memref<1x1x2xf32, #tpu.memory_space<vmem>>, vector<1x1x2xf32>
    %156 = vector.shape_cast %155 : vector<1x1x2xf32> to vector<1x2xf32>
    %157 = vector.shape_cast %154 : vector<1x2xf32> to vector<1x1x2xf32>
    tpu.vector_store %arg9[%c0_59, %c0_60, %c0_61], %157 {strides = array<i32>} : memref<1x1x2xf32, #tpu.memory_space<vmem>>, vector<1x1x2xf32>,
    return
  }
  func.func @transform_0(%arg0: i32) -> (i32, i32, i32) {
    %c0_i32 = arith.constant 0 : i32
    %c0_i32_0 = arith.constant 0 : i32
    %c0_i32_1 = arith.constant 0 : i32
    return %arg0, %c0_i32, %c0_i32_0 : i32, i32, i32
  }
  func.func @transform_1(%arg0: i32) -> (i32, i32, i32) {
    %c0_i32 = arith.constant 0 : i32
    %c0_i32_0 = arith.constant 0 : i32
    %c0_i32_1 = arith.constant 0 : i32
    return %arg0, %c0_i32, %c0_i32_0 : i32, i32, i32
  }
  func.func @transform_2(%arg0: i32) -> (i32, i32) {
    %c0_i32 = arith.constant 0 : i32
    %c0_i32_0 = arith.constant 0 : i32
    %c0_i32_1 = arith.constant 0 : i32
    return %c0_i32, %c0_i32_0 : i32, i32
  }
  func.func @transform_3(%arg0: i32) -> (i32, i32) {
    %c0_i32 = arith.constant 0 : i32
    %c0_i32_0 = arith.constant 0 : i32
    %c0_i32_1 = arith.constant 0 : i32
    return %c0_i32, %c0_i32_0 : i32, i32
  }
  func.func @transform_4(%arg0: i32) -> (i32, i32, i32) {
    %c0_i32 = arith.constant 0 : i32
    %c0_i32_0 = arith.constant 0 : i32
    %c0_i32_1 = arith.constant 0 : i32
    %c0_i32_2 = arith.constant 0 : i32
    return %c0_i32, %c0_i32_0, %c0_i32_1 : i32, i32, i32
  }
  func.func @transform_5(%arg0: i32) -> (i32, i32) {
    %c0_i32 = arith.constant 0 : i32
    %c0_i32_0 = arith.constant 0 : i32
    %c0_i32_1 = arith.constant 0 : i32
    return %c0_i32, %c0_i32_0 : i32, i32
  }
  func.func @transform_6(%arg0: i32) -> (i32, i32) {
    %c0_i32 = arith.constant 0 : i32
    %c0_i32_0 = arith.constant 0 : i32
    %c0_i32_1 = arith.constant 0 : i32
    return %c0_i32, %c0_i32_0 : i32, i32
  }
  func.func @transform_7(%arg0: i32) -> (i32, i32) {
    %c0_i32 = arith.constant 0 : i32
    %c0_i32_0 = arith.constant 0 : i32
    %c0_i32_1 = arith.constant 0 : i32
    return %c0_i32, %c0_i32_0 : i32, i32
  }
  func.func @transform_8(%arg0: i32) -> (i32, i32, i32) {
    %c0_i32 = arith.constant 0 : i32
    %c0_i32_0 = arith.constant 0 : i32
    %c0_i32_1 = arith.constant 0 : i32
    return %arg0, %c0_i32, %c0_i32_0 : i32, i32, i32
  }
}

</mosaic_0001>

<bundles_post_ra>
// kernel: biin_forward.1
= control target key start
LH: loop header
LB: loop body
LE: loop exit
PB: predicated region body
PF: predicated region fallthrough
CT: control target
= control target key end

     0   :  { %13 = vsyncpa [#allocation3], 0  ;;  %s3288_s0 = inlined_call_operand.vmem [shape: bf16[2,8,768], index: 0, kind: input, shape index: {}]   ;;  %s3289_s1 = inlined_call_operand.vmem [shape: bf16[2,8,768], index: 1, kind: input, shape index: {}]   ;;  %s3290_s2 = inlined_call_operand.vmem [shape: bf16[768,64], index: 2, kind: input, shape index: {}]   ;;  %s3291_s3 = inlined_call_operand.vmem [shape: f32[1,64], index: 3, kind: input, shape index: {}]   ;;  %s3292_s4 = inlined_call_operand.vmem [shape: bf16[9,64,32], index: 4, kind: input, shape index: {}]   ;;  %s3293_s5 = inlined_call_operand.vmem [shape: f32[1,32], index: 5, kind: input, shape index: {}]   ;;  %s3294_s6 = inlined_call_operand.vmem [shape: f32[2,32], index: 6, kind: input, shape index: {}]   ;;  %s3295_s7 = inlined_call_operand.vmem [shape: f32[1,2], index: 7, kind: input, shape index: {}]   ;;  %s3296_s8 = inlined_call_operand.hbm [shape: f32[2,1,2], index: 8, kind: output, shape index: {}]  }
   0x1   :  { %15 = vsyncpa [#allocation3 + $0x1], 0  ;;  %s2623_s27 = smov 0   ;;  %s2625_s28 = smov 0  }
   0x2   :  { %s2627_s29 = smov 0   ;;  %s2629_s30 = smov 0  }
   0x3 LB: > { %s2644_s9 = sadd.s32 4294967295, %s2575_s30   ;;  %s1934_s10 = sadd.s32 4294967294, %s2575_s30   ;;  %s2575_s30 = sphi %s2629_s30, %s3306_s30   ;;  %s2571_s29 = sphi %s2627_s29, %s3305_s29   ;;  %s2567_s28 = sphi %s2625_s28, %s3304_s28   ;;  %s2563_s27 = sphi %s2623_s27, %s3303_s27  }
   0x4   : > { %s2648_s11 = sadd.s32 1, %s2575_s30   ;;  %s206_s12 = sadd.s32 1, %s2571_s29 }
   0x5   : > { %s203_s13 = ssub.s32 %s2575_s30, %s2648_s11  ;;  %p216_p0 = scmp.ne.s32.totalorder %s2571_s29, %s2567_s28 }
   0x6   : > { %p204_p1 = scmp.eq.s32.totalorder %s203_s13, 0  ;;  %p217_p2 = scmp.eq.s32.totalorder %s2644_s9, 1 }
   0x7   : > { %p222_p3 = scmp.ne.s32.totalorder %s2567_s28, %s2563_s27  ;;  %p223_p4 = scmp.eq.s32.totalorder %s1934_s10, 1 }
   0x8   : > { %s2659_s14 = scalar_select %p204_p1, %s2571_s29, %s206_s12  }
   0x9   : > { %p2661_p5 = por %p217_p2, %p216_p0  ;;  %p2665_p6 = por %p223_p4, %p222_p3 }
   0xa   : > { %p1937_p7 = scmp.ge.s32.totalorder %s2575_s30, 1  ;;  %p275_p8 = scmp.lt.s32.totalorder %s2575_s30, 3 }
   0xc   : > { %p276_p9 = pnand %p1937_p7, %p275_p8 }
   0xd   : > { %p313_p10 = scmp.lt.s32.totalorder (!%p276_p9), %s2644_s9, 1  ;;  %s311_s17 = sand.u32 (!%p276_p9), 1, %s2567_s28  }
   0xe   : > { %279 = sbr.rel (%p276_p9) target bundleno = 842 (0x34a), region = 52  ;;  %s1855_s23 = scalar_lea.sflag (!%p276_p9), [#allocation3], %s311_s17 }
  0x13   : > { %v2385_v0 = vld [vmem:[%s3290_s2 + $0x38] sm:$0xff]  ;;  %v2384_v3 = vld [vmem:[%s3290_s2 + $0x30] sm:$0xff]  ;;  %v2383_v6 = vld [vmem:[%s3290_s2 + $0x28] sm:$0xff]  ;;  %s314_s22 = scalar_select %p313_p10, %s2644_s9, 1  ;;  %vm360_vm0 = vcmask 1043456   ;;  %vm972_vm3 = vcmask 523264  }
  0x14   : > { %v2401_v1 = vld [vmem:[%s3290_s2 + $0xb8] sm:$0xff]  ;;  %773 = vmatpush.bf16.msra.mxu0 %v2385_v0  ;;  %v2400_v4 = vld [vmem:[%s3290_s2 + $0xb0] sm:$0xff]  ;;  %v2399_v7 = vld [vmem:[%s3290_s2 + $0xa8] sm:$0xff]  ;;  %vm1805_vm4 = vcmask 261120   ;;  %vm1829_vm5 = vcmask 254976   ;;  %vm1852_vm6 = vcmask 8192  }
  0x15   : > { %v2393_v2 = vld [vmem:[%s3290_s2 + $0x78] sm:$0xff]  ;;  %801 = vmatpush.bf16.msra.mxu3 %v2401_v1  ;;  %v2392_v5 = vld [vmem:[%s3290_s2 + $0x70] sm:$0xff]  ;;  %v2391_v8 = vld [vmem:[%s3290_s2 + $0x68] sm:$0xff]  ;;  %s2462_s13 = smul.u32 24, %s314_s22  ;;  %s2533_s22 = scalar_lea.hbm %s3296_s8, 2 }
  0x16   : > { %787 = vmatpush.bf16.msra.mxu1 %v2393_v2  ;;  %v2382_v9 = vld [vmem:[%s3290_s2 + $0x20] sm:$0xff]  ;;  %v2381_v12 = vld [vmem:[%s3290_s2 + $0x18] sm:$0xff]  ;;  %v2380_v15 = vld [vmem:[%s3290_s2 + $0x10] sm:$0xff] }
  0x17   : > { %v2398_v10 = vld [vmem:[%s3290_s2 + $0xa0] sm:$0xff]  ;;  %v2397_v13 = vld [vmem:[%s3290_s2 + $0x98] sm:$0xff]  ;;  %s2721_s26 = scalar_lea.vmem %s3288_s0, %s2462_s13  ;;  %s2726_s12 = scalar_lea.vmem %s3289_s1, %s2462_s13  ;;  %v2396_v16 = vld [vmem:[%s3290_s2 + $0x90] sm:$0xff] }
  0x18   : > { %774 = vmatpush.bf16.msra.mxu0 %v2384_v3  ;;  %v2390_v11 = vld [vmem:[%s3290_s2 + $0x60] sm:$0xff]  ;;  %v2389_v14 = vld [vmem:[%s3290_s2 + $0x58] sm:$0xff]  ;;  %v2388_v17 = vld [vmem:[%s3290_s2 + $0x50] sm:$0xff] }
  0x19   : > { %802 = vmatpush.bf16.msra.mxu3 %v2400_v4  ;;  %v2738_v18 = vld [vmem:[%s2721_s26 + $0x8] sm:$0xff]  ;;  %v324_v20 = vld [vmem:[%s2721_s26] sm:$0xff]  ;;  %v2409_v35 = vld [vmem:[%s3290_s2 + $0xf8] sm:$0xff] }
  0x1a   : > { %788 = vmatpush.bf16.msra.mxu1 %v2392_v5  ;;  %v2741_v19 = vld [vmem:[%s2726_s12 + $0x8] sm:$0xff]  ;;  %v327_v21 = vld [vmem:[%s2726_s12] sm:$0xff]  ;;  %v335_v24 = vunpack.c.l.b16 %v2738_v18  ;;  %v333_v27 = vunpack.c.l.b16 %v324_v20  ;;  %v334_v29 = vunpack.c.h.b16 %v324_v20  ;;  %v2417_v36 = vld [vmem:[%s3290_s2 + $0x138] sm:$0xff]  ;;  %v336_v63 = vunpack.c.h.b16 %v2738_v18 }
  0x1b   : > { %v2379_v22 = vld [vmem:[%s3290_s2 + $0x8] sm:$0xff]  ;;  %v350_v25 = vunpack.c.l.b16 %v2741_v19  ;;  %v348_v28 = vunpack.c.l.b16 %v327_v21  ;;  %v349_v30 = vunpack.c.h.b16 %v327_v21  ;;  %v2378_v31 = vld [vmem:[%s3290_s2] sm:$0xff]  ;;  %v2425_v40 = vld [vmem:[%s3290_s2 + $0x178] sm:$0xff]  ;;  %v351_v2 = vunpack.c.h.b16 %v2741_v19 }
  0x1c   : > { %775 = vmatpush.bf16.msra.mxu0 %v2383_v6  ;;  %v2395_v23 = vld [vmem:[%s3290_s2 + $0x88] sm:$0xff]  ;;  %v2394_v32 = vld [vmem:[%s3290_s2 + $0x80] sm:$0xff]  ;;  %v341_v33 = vpack.c.b16 %v335_v24, %v335_v24  ;;  %v339_v37 = vpack.c.b16 %v333_v27, %v333_v27  ;;  %v340_v41 = vpack.c.b16 %v334_v29, %v334_v29  ;;  %v2408_v44 = vld [vmem:[%s3290_s2 + $0xf0] sm:$0xff]  ;;  %v859_v21 = vlaneseq }
  0x1d   : > { %803 = vmatpush.bf16.msra.mxu3 %v2399_v7  ;;  %v2387_v26 = vld [vmem:[%s3290_s2 + $0x48] sm:$0xff]  ;;  %v356_v34 = vpack.c.b16 %v350_v25, %v350_v25  ;;  %v354_v38 = vpack.c.b16 %v348_v28, %v348_v28  ;;  %v2386_v39 = vld [vmem:[%s3290_s2 + $0x40] sm:$0xff]  ;;  %v355_v42 = vpack.c.b16 %v349_v30, %v349_v30  ;;  %v2416_v45 = vld [vmem:[%s3290_s2 + $0x130] sm:$0xff] }
  0x1e   : > { %789 = vmatpush.bf16.msra.mxu1 %v2391_v8  ;;  %v2424_v47 = vld [vmem:[%s3290_s2 + $0x170] sm:$0xff]  ;;  %v2407_v49 = vld [vmem:[%s3290_s2 + $0xe8] sm:$0xff]  ;;  %v2406_v52 = vld [vmem:[%s3290_s2 + $0xe0] sm:$0xff]  ;;  %v342_v8 = vpack.c.b16 %v336_v63, %v336_v63 }
  0x1f   : > { %v371_v43 = vsel %vm360_vm0, %v341_v33, %v356_v34  ;;  %v363_v46 = vsel %vm360_vm0, %v339_v37, %v354_v38  ;;  %v367_v48 = vsel %vm360_vm0, %v340_v41, %v355_v42  ;;  %v2415_v50 = vld [vmem:[%s3290_s2 + $0x128] sm:$0xff]  ;;  %v2414_v53 = vld [vmem:[%s3290_s2 + $0x120] sm:$0xff]  ;;  %v2405_v55 = vld [vmem:[%s3290_s2 + $0xd8] sm:$0xff] }
  0x20   : > { %776 = vmatpush.bf16.msra.mxu0 %v2382_v9  ;;  %v2423_v51 = vld [vmem:[%s3290_s2 + $0x168] sm:$0xff]  ;;  %v2422_v54 = vld [vmem:[%s3290_s2 + $0x160] sm:$0xff]  ;;  %v2413_v56 = vld [vmem:[%s3290_s2 + $0x118] sm:$0xff] }
  0x21   : > { %804 = vmatpush.bf16.msra.mxu3 %v2398_v10  ;;  %v2421_v57 = vld [vmem:[%s3290_s2 + $0x158] sm:$0xff]  ;;  %v2404_v58 = vld [vmem:[%s3290_s2 + $0xd0] sm:$0xff]  ;;  %v2403_v0 = vld [vmem:[%s3290_s2 + $0xc8] sm:$0xff] }
  0x22   : > { %790 = vmatpush.bf16.msra.mxu1 %v2390_v11  ;;  %v2412_v59 = vld [vmem:[%s3290_s2 + $0x110] sm:$0xff]  ;;  %v2411_v1 = vld [vmem:[%s3290_s2 + $0x108] sm:$0xff]  ;;  %v2402_v9 = vld [vmem:[%s3290_s2 + $0xc0] sm:$0xff]  ;;  %v357_v11 = vpack.c.b16 %v351_v2, %v351_v2 }
  0x23   : > { %v326_v60 = vld [vmem:[%s2721_s26 + $0x10] sm:$0xff]  ;;  %v2419_v5 = vld [vmem:[%s3290_s2 + $0x148] sm:$0xff]  ;;  %v2410_v10 = vld [vmem:[%s3290_s2 + $0x100] sm:$0xff]  ;;  %s1863_s26 = scalar_lea.hbm %s3296_s8, %s2644_s9 }
  0x24   : > { %777 = vmatpush.bf16.msra.mxu0 %v2381_v12  ;;  %v329_v61 = vld [vmem:[%s2726_s12 + $0x10] sm:$0xff]  ;;  %v337_v3 = vunpack.c.l.b16 %v326_v60  ;;  %v338_v6 = vunpack.c.h.b16 %v326_v60  ;;  %v2433_v20 = vld [vmem:[%s3292_s4 + $0x38] sm:$0xff]  ;;  %v2431_v33 = vld [vmem:[%s3292_s4 + $0x28] sm:$0xff]  ;;  %s312_s12 = scalar_lea.vmem [#allocation2], %s311_s17  ;;  %s1867_s21 = sshll.u32 %s1863_s26, 4  ;;  %s1868_s21 = int_to_ptr.hbm [resolvable:$true] %s1867_s21 }
  0x25   : > { %805 = vmatpush.bf16.msra.mxu3 %v2397_v13  ;;  %v2420_v62 = vld [vmem:[%s3290_s2 + $0x150] sm:$0xff]  ;;  %v352_v4 = vunpack.c.l.b16 %v329_v61  ;;  %v353_v7 = vunpack.c.h.b16 %v329_v61  ;;  %989 = vmatpush.bf16.msra.mxu2 %v2433_v20  ;;  %v2437_v24 = vld [vmem:[%s3292_s4 + $0x58] sm:$0xff]  ;;  %v2427_v34 = vld [vmem:[%s3292_s4 + $0x8] sm:$0xff]  ;;  %s1865_s20 = sshll.u32 %s312_s12, 4  ;;  %s2527_s13 = sshra.s32 %s1868_s21, 4  ;;  %s1866_s20 = int_to_ptr.vmem [resolvable:$true] %s1865_s20  ;;  %s2528_s13 = int_to_ptr.hbm [resolvable:$true] %s2527_s13 }
  0x26   : > { %791 = vmatpush.bf16.msra.mxu1 %v2389_v14  ;;  %v343_v12 = vpack.c.b16 %v337_v3, %v337_v3  ;;  %v2418_v14 = vld [vmem:[%s3290_s2 + $0x140] sm:$0xff]  ;;  %v2441_v25 = vld [vmem:[%s3292_s4 + $0x78] sm:$0xff]  ;;  %v2428_v29 = vld [vmem:[%s3292_s4 + $0x10] sm:$0xff]  ;;  %s2529_s24 = scalar_lea.hbm %s2528_s13, 1  ;;  %p2534_p0 = scmp.lt.s32.totalorder %s2528_s13, %s3296_s8 }
  0x27   : > { %v358_v13 = vpack.c.b16 %v352_v4, %v352_v4  ;;  %v2436_v30 = vld [vmem:[%s3292_s4 + $0x50] sm:$0xff]  ;;  %v2439_v37 = vld [vmem:[%s3292_s4 + $0x68] sm:$0xff]  ;;  %v2430_v38 = vld [vmem:[%s3292_s4 + $0x20] sm:$0xff]  ;;  %p2530_p11 = scmp.ne.s32.totalorder %s2528_s13, %s2529_s24  ;;  %p2535_p1 = scmp.lt.s32.totalorder %s2533_s22, %s2529_s24 }
  0x28   : > { %778 = vmatpush.bf16.msra.mxu0 %v2380_v15  ;;  %v344_v15 = vpack.c.b16 %v338_v6, %v338_v6  ;;  %v2426_v42 = vld [vmem:[%s3292_s4] sm:$0xff] }
  0x29   : > { %806 = vmatpush.bf16.msra.mxu3 %v2396_v16  ;;  %v359_v16 = vpack.c.b16 %v353_v7, %v353_v7  ;;  %v379_v18 = vsel %vm360_vm0, %v343_v12, %v358_v13  ;;  %p2531_p12 = pnand %p2530_p11, %p2661_p5  ;;  %p2536_p2 = por %p2535_p1, %p2534_p0 }
  0x2a   : > { %792 = vmatpush.bf16.msra.mxu1 %v2388_v17  ;;  %v375_v17 = vsel %vm360_vm0, %v342_v8, %v357_v11 }
  0x2b   : > { %v383_v19 = vsel %vm360_vm0, %v344_v15, %v359_v16  ;;  %p2532_p13 = pneg %p2531_p12 }
  0x2c   : > { %779 = vmatpush.bf16.msra.mxu0 %v2379_v22  ;;  %v2851_v22 = vshrl.u32 %v859_v21, 7 }
  0x2d   : > { %807 = vmatpush.bf16.msra.mxu3 %v2395_v23  ;;  %v2429_v23 = vld [vmem:[%s3292_s4 + $0x18] sm:$0xff]  ;;  %p2537_p3 = pnand %p2536_p2, %p2532_p13 }
  0x2e   : > { %793 = vmatpush.bf16.msra.mxu1 %v2387_v26  ;;  %v2432_v26 = vld [vmem:[%s3292_s4 + $0x30] sm:$0xff]  ;;  %2503 = vset.pattern.permute.xlu0 %v2851_v22  ;;  %v865_v60 = vand.u32 7, %v2851_v22 }
  0x2f   : > { %990 = vmatpush.bf16.msra.mxu2 %v2432_v26 }
  0x30   : > { %780 = vmatpush.bf16.msra.mxu0 %v2378_v31  ;;  %v2440_v31 = vld [vmem:[%s3292_s4 + $0x70] sm:$0xff]  ;;  %vm2911_vm1 = vcmp.eq.s32.totalorder %v865_v60, 0  ;;  %vm2931_vm2 = vcmp.eq.s32.totalorder %v865_v60, 7 }
  0x31   : > { %808 = vmatpush.bf16.msra.mxu3 %v2394_v32 }
  0x32   : > { %794 = vmatpush.bf16.msra.mxu1 %v2386_v39 }
  0x33   : > { %781 = vmatmul.bf16.vlgmr.msra.gmra.mxu0 %v363_v46  ;;  %991 = vmatpush.bf16.msra.mxu2 %v2431_v33  ;;  %v2445_v46 = vld [vmem:[%s3292_s4 + $0x98] sm:$0xff] }
  0x34   : > { %829 = vmatpush.bf16.msrb.mxu0 %v2417_v36  ;;  %809 = vmatmul.bf16.vlgmr.msra.gmra.mxu3 %v371_v43  ;;  %v2506_v36 = vld [vmem:[%s3291_s3] ss:$0 sm:$0xff] }
  0x35   : > { %815 = vmatpush.bf16.msrb.mxu3 %v2409_v35  ;;  %795 = vmatmul.bf16.vlgmr.msra.gmra.mxu1 %v367_v48  ;;  %v2435_v35 = vld [vmem:[%s3292_s4 + $0x48] sm:$0xff]  ;;  %v2434_v43 = vld [vmem:[%s3292_s4 + $0x40] sm:$0xff] }
  0x36   : > { %843 = vmatpush.bf16.msrb.mxu1 %v2425_v40 }
  0x37   : > { %992 = vmatpush.bf16.msra.mxu2 %v2430_v38 }
  0x38   : > { %830 = vmatpush.bf16.msrb.mxu0 %v2416_v45 }
  0x39   : > { %816 = vmatpush.bf16.msrb.mxu3 %v2408_v44  ;;  %v2438_v44 = vld [vmem:[%s3292_s4 + $0x60] sm:$0xff] }
  0x3a   : > { %844 = vmatpush.bf16.msrb.mxu1 %v2424_v47 }
  0x3b   : > { %1352 = vmatpush.bf16.msrb.mxu2 %v2445_v46 }
  0x3c   : > { %831 = vmatpush.bf16.msrb.mxu0 %v2415_v50 }
  0x3d   : > { %817 = vmatpush.bf16.msrb.mxu3 %v2407_v49 }
  0x3e   : > { %845 = vmatpush.bf16.msrb.mxu1 %v2423_v51 }
  0x40   : > { %832 = vmatpush.bf16.msrb.mxu0 %v2414_v53 }
  0x41   : > { %818 = vmatpush.bf16.msrb.mxu3 %v2406_v52 }
  0x42   : > { %846 = vmatpush.bf16.msrb.mxu1 %v2422_v54 }
  0x44   : > { %833 = vmatpush.bf16.msrb.mxu0 %v2413_v56 }
  0x45   : > { %819 = vmatpush.bf16.msrb.mxu3 %v2405_v55 }
  0x46   : > { %847 = vmatpush.bf16.msrb.mxu1 %v2421_v57 }
  0x48   : > { %834 = vmatpush.bf16.msrb.mxu0 %v2412_v59 }
  0x49   : > { %820 = vmatpush.bf16.msrb.mxu3 %v2404_v58 }
  0x4a   : > { %848 = vmatpush.bf16.msrb.mxu1 %v2420_v62  ;;  %v2444_v62 = vld [vmem:[%s3292_s4 + $0x90] sm:$0xff] }
  0x4b   : > { %1353 = vmatpush.bf16.msrb.mxu2 %v2444_v62 }
  0x4c   : > { %835 = vmatpush.bf16.msrb.mxu0 %v2411_v1 }
  0x4d   : > { %821 = vmatpush.bf16.msrb.mxu3 %v2403_v0 }
  0x4e   : > { %849 = vmatpush.bf16.msrb.mxu1 %v2419_v5 }
  0x50   : > { %836 = vmatpush.bf16.msrb.mxu0 %v2410_v10 }
  0x51   : > { %822 = vmatpush.bf16.msrb.mxu3 %v2402_v9 }
  0x52   : > { %850 = vmatpush.bf16.msrb.mxu1 %v2418_v14 }
  0x53   : > { %837 = vmatmul.bf16.vlgmr.msrb.gmra.mxu0 %v379_v18 }
  0x54   : > { %823 = vmatmul.bf16.vlgmr.msrb.gmra.mxu3 %v375_v17  ;;  %1140 = vmatpush.bf16.msra.mxu0 %v2437_v24 }
  0x55   : > { %851 = vmatmul.bf16.vlgmr.msrb.gmra.mxu1 %v383_v19  ;;  %1054 = vmatpush.bf16.msra.mxu3 %v2429_v23 }
  0x56   : > { %1258 = vmatpush.bf16.msra.mxu1 %v2441_v25 }
  0x58   : > { %1141 = vmatpush.bf16.msra.mxu0 %v2436_v30 }
  0x59   : > { %1055 = vmatpush.bf16.msra.mxu3 %v2428_v29 }
  0x5a   : > { %1259 = vmatpush.bf16.msra.mxu1 %v2440_v31 }
  0x5c   : > { %1142 = vmatpush.bf16.msra.mxu0 %v2435_v35 }
  0x5d   : > { %1056 = vmatpush.bf16.msra.mxu3 %v2427_v34 }
  0x5e   : > { %1260 = vmatpush.bf16.msra.mxu1 %v2439_v37 }
  0x60   : > { %1143 = vmatpush.bf16.msra.mxu0 %v2434_v43 }
  0x61   : > { %1057 = vmatpush.bf16.msra.mxu3 %v2426_v42 }
  0x62   : > { %1261 = vmatpush.bf16.msra.mxu1 %v2438_v44 }
  0xb0   : > { %v782_v27 = vpop.f32.mrf.mxu0 }
  0xb1   : > { %v783_v39 = vadd.f32 %v2506_v36, %v782_v27 }
  0xb2   : > { %v796_v32 = vpop.f32.mrf.mxu1 }
  0xb3   : > { %v797_v47 = vadd.f32 %v796_v32, %v783_v39 }
  0xb7   : > { %v810_v28 = vpop.f32.mrf.mxu3 }
  0xb8   : > { %v784_v40 = vpop.f32.mrf.mxu0  ;;  %v811_v48 = vadd.f32 %v810_v28, %v797_v47  ;;  %v2443_v28 = vld [vmem:[%s3292_s4 + $0x88] sm:$0xff] }
  0xb9   : > { %v785_v49 = vadd.f32 %v2506_v36, %v784_v40  ;;  %1354 = vmatpush.bf16.msrb.mxu2 %v2443_v28 }
  0xba   : > { %v798_v45 = vpop.f32.mrf.mxu1 }
  0xbb   : > { %v799_v54 = vadd.f32 %v798_v45, %v785_v49 }
  0xbf   : > { %v812_v41 = vpop.f32.mrf.mxu3 }
  0xc0   : > { %v813_v57 = vadd.f32 %v812_v41, %v799_v54 }
  0xd0   : > { %v838_v50 = vpop.f32.mrf.mxu0 }
  0xd2   : > { %v852_v53 = vpop.f32.mrf.mxu1 }
  0xd7   : > { %v824_v51 = vpop.f32.mrf.mxu3 }
  0xd8   : > { %v825_v52 = vadd.f32 %v824_v51, %v811_v48  ;;  %v840_v61 = vpop.f32.mrf.mxu0 }
  0xda   : > { %v839_v55 = vadd.f32 %v838_v50, %v825_v52  ;;  %v854_v0 = vpop.f32.mrf.mxu1 }
  0xdc   : > { %v853_v56 = vadd.f32 %v852_v53, %v839_v55 }
  0xde   : > { %2509 = vtanh.f32 %v853_v56 }
  0xdf   : > { %v826_v58 = vpop.f32.mrf.mxu3 }
  0xe0   : > { %v827_v59 = vadd.f32 %v826_v58, %v813_v57 }
  0xe2   : > { %v841_v63 = vadd.f32 %v840_v61, %v827_v59  ;;  %v2442_v61 = vld [vmem:[%s3292_s4 + $0x80] sm:$0xff] }
  0xe3   : > { %1355 = vmatpush.bf16.msrb.mxu2 %v2442_v61 }
  0xe4   : > { %v2909_v1 = vpop.eup %2509  ;;  %v855_v2 = vadd.f32 %v854_v0, %v841_v63 }
  0xe5   : > { %v875_v4 = vrot.slane %v2909_v1, 7  ;;  %v877_v9 = vrot.slane %v2909_v1, 1  ;;  %v2936_v16 = vperm.slane %v2909_v1, 0  ;;  %v1175_v36 = vrot.slane %v2909_v1, 2 }
  0xe6   : > { %2511 = vtanh.f32 %v855_v2  ;;  %v1176_v37 = vrot.slane %v2909_v1, 3  ;;  %v1177_v38 = vrot.slane %v2909_v1, 4  ;;  %v1178_v42 = vrot.slane %v2909_v1, 5 }
  0xe7   : > { %v2920_v5 = vsel %vm2911_vm1, 0.0, %v875_v4  ;;  %v2948_v20 = vperm.slane %v877_v9, 0  ;;  %v2981_v44 = vperm.slane %v1175_v36, 0  ;;  %v1179_v49 = vrot.slane %v2909_v1, 6 }
  0xe8   : > { %v884_v6 = vrot.slane %v2920_v5, 1  ;;  %v891_v8 = vperm.slane %v2920_v5, 0  ;;  %v885_v32 = vrot.slane %v2920_v5, 2  ;;  %v886_v33 = vrot.slane %v2920_v5, 3 }
  0xe9   : > { %v2983_v45 = vperm.slane %v1176_v37, 0  ;;  %v2985_v46 = vperm.slane %v1177_v38, 0  ;;  %v3006_v58 = vperm.slane %v1178_v42, 0  ;;  %v3022_v2 = vperm.slane %v1179_v49, 0  ;;  %v2450_v42 = vld [vmem:[%s3292_s4 + $0xc0] sm:$0xff] }
  0xea   : > { %v892_v7 = vperm.slane %v884_v6, 0  ;;  %v893_v34 = vperm.slane %v885_v32, 0  ;;  %v894_v35 = vperm.slane %v886_v33, 0  ;;  %v3026_v3 = vperm.slane %v875_v4, 0  ;;  %v2455_v32 = vld [vmem:[%s3292_s4 + $0xe8] sm:$0xff]  ;;  %v2454_v49 = vld [vmem:[%s3292_s4 + $0xe0] sm:$0xff] }
  0xec   : > { %v2925_v10 = vpop.eup %2511 }
  0xed   : > { %v879_v11 = vrot.slane %v2925_v10, 7  ;;  %v881_v12 = vrot.slane %v2925_v10, 1  ;;  %v927_v13 = vmul.f32 %v2925_v10, %v891_v8  ;;  %v928_v14 = vmul.f32 %v2925_v10, %v892_v7 }
  0xee   : > { %v929_v40 = vmul.f32 %v2925_v10, %v893_v34  ;;  %v930_v41 = vmul.f32 %v2925_v10, %v894_v35 }
  0xef   : > { %v2940_v17 = vsel %vm2911_vm1, 0.0, %v879_v11  ;;  %v2944_v18 = vsel %vm2931_vm2, 0.0, %v881_v12  ;;  %v935_v19 = vpack.c.bf16 %v928_v14, %v927_v13  ;;  %v2449_v13 = vld [vmem:[%s3292_s4 + $0xb8] sm:$0xff] }
  0xf0   : > { %v907_v22 = vmul.f32 %v891_v8, %v2940_v17  ;;  %v908_v23 = vmul.f32 %v892_v7, %v2940_v17  ;;  %v1079_v24 = vmul.f32 %v891_v8, %v2944_v18  ;;  %v1080_v25 = vmul.f32 %v892_v7, %v2944_v18  ;;  %v2453_v14 = vld [vmem:[%s3292_s4 + $0xd8] sm:$0xff]  ;;  %1446 = vmatpush.bf16.msrb.mxu3 %v2449_v13 }
  0xf1   : > { %2156 = vmatmul.msk.bf16.vlgmr.msra.gmra.mxu2 %vm972_vm3, %v935_v19  ;;  %v1197_v26 = vmul.f32 %v2936_v16, %v2940_v17  ;;  %v1198_v27 = vmul.f32 %v2948_v20, %v2940_v17  ;;  %v2972_v39 = vmul.f32 %v2936_v16, %v2944_v18  ;;  %v2979_v43 = vmul.f32 %v2948_v20, %v2944_v18  ;;  %v2457_v19 = vld [vmem:[%s3292_s4 + $0xf8] sm:$0xff] }
  0xf2   : > { %v915_v29 = vpack.c.bf16 %v908_v23, %v907_v22  ;;  %v1087_v30 = vpack.c.bf16 %v1080_v25, %v1079_v24  ;;  %v909_v47 = vmul.f32 %v893_v34, %v2940_v17  ;;  %v910_v48 = vmul.f32 %v894_v35, %v2940_v17  ;;  %1564 = vmatpush.bf16.msrb.mxu0 %v2453_v14  ;;  %v2448_v25 = vld [vmem:[%s3292_s4 + $0xb0] sm:$0xff] }
  0xf3   : > { %v1205_v31 = vpack.c.bf16 %v1198_v27, %v1197_v26  ;;  %v1393_v50 = vpack.c.bf16 %v2979_v43, %v2972_v39  ;;  %v1081_v51 = vmul.f32 %v893_v34, %v2944_v18  ;;  %v1082_v52 = vmul.f32 %v894_v35, %v2944_v18  ;;  %v2452_v26 = vld [vmem:[%s3292_s4 + $0xd0] sm:$0xff]  ;;  %1658 = vmatpush.bf16.msrb.mxu1 %v2457_v19 }
  0xf4   : > { %2176 = vmatmul.msk.bf16.vlgmr.msra.gmra.mxu3 %vm972_vm3, %v915_v29  ;;  %2204 = vmatmul.msk.bf16.vlgmr.msra.gmra.mxu0 %vm972_vm3, %v1087_v30  ;;  %v2996_v53 = vmul.f32 %v2981_v44, %v2944_v18  ;;  %v3000_v54 = vmul.f32 %v2983_v45, %v2944_v18  ;;  %v936_v55 = vpack.c.bf16 %v930_v41, %v929_v40  ;;  %v887_v7 = vrot.slane %v2920_v5, 4  ;;  %v2456_v27 = vld [vmem:[%s3292_s4 + $0xf0] sm:$0xff]  ;;  %v2447_v30 = vld [vmem:[%s3292_s4 + $0xa8] sm:$0xff]  ;;  %v2446_v41 = vld [vmem:[%s3292_s4 + $0xa0] sm:$0xff] }
  0xf5   : > { %2232 = vmatmul.msk.bf16.vlgmr.msra.gmra.mxu1 %vm972_vm3, %v1205_v31  ;;  %v1199_v56 = vmul.f32 %v2981_v44, %v2940_v17  ;;  %v1200_v57 = vmul.f32 %v2983_v45, %v2940_v17  ;;  %v3012_v60 = vmul.f32 %v2985_v46, %v2944_v18  ;;  %v3020_v62 = vmul.f32 %v3006_v58, %v2944_v18  ;;  %v2451_v31 = vld [vmem:[%s3292_s4 + $0xc8] sm:$0xff] }
  0xf6   : > { %v1394_v59 = vpack.c.bf16 %v3000_v54, %v2996_v53  ;;  %v916_v63 = vpack.c.bf16 %v910_v48, %v909_v47  ;;  %v1088_v0 = vpack.c.bf16 %v1082_v52, %v1081_v51  ;;  %v888_v8 = vrot.slane %v2920_v5, 5  ;;  %1447 = vmatpush.bf16.msrb.mxu3 %v2448_v25  ;;  %1565 = vmatpush.bf16.msrb.mxu0 %v2452_v26  ;;  %v2461_v51 = vld [vmem:[%s3292_s4 + $0x118] sm:$0xff] }
  0xf7   : > { %v1206_v6 = vpack.c.bf16 %v1200_v57, %v1199_v56  ;;  %v1395_v11 = vpack.c.bf16 %v3020_v62, %v3012_v60  ;;  %v3036_v12 = vmul.f32 %v3022_v2, %v2944_v18  ;;  %v3040_v4 = vmul.f32 %v3026_v3, %v2944_v18  ;;  %1659 = vmatpush.bf16.msrb.mxu1 %v2456_v27 }
  0xf8   : > { %v895_v23 = vperm.slane %v887_v7, 0  ;;  %v896_v24 = vperm.slane %v888_v8, 0  ;;  %v1201_v38 = vmul.f32 %v2985_v46, %v2940_v17  ;;  %v1202_v40 = vmul.f32 %v3006_v58, %v2940_v17  ;;  %1752 = vmatpush.bf16.msra.mxu2 %v2461_v51 }
  0xf9   : > { %v1396_v22 = vpack.c.bf16 %v3040_v4, %v3036_v12  ;;  %v890_v56 = vrot.slane %v2920_v5, 7  ;;  %v1203_v14 = vmul.f32 %v3022_v2, %v2940_v17  ;;  %v1204_v19 = vmul.f32 %v3026_v3, %v2940_v17 }
  0xfa   : > { %v931_v28 = vmul.f32 %v2925_v10, %v895_v23  ;;  %v932_v29 = vmul.f32 %v2925_v10, %v896_v24  ;;  %v911_v33 = vmul.f32 %v895_v23, %v2940_v17  ;;  %v912_v34 = vmul.f32 %v896_v24, %v2940_v17  ;;  %1448 = vmatpush.bf16.msrb.mxu3 %v2447_v30 }
  0xfb   : > { %v1083_v35 = vmul.f32 %v895_v23, %v2944_v18  ;;  %v1084_v36 = vmul.f32 %v896_v24, %v2944_v18  ;;  %1566 = vmatpush.bf16.msrb.mxu0 %v2451_v31  ;;  %1660 = vmatpush.bf16.msrb.mxu1 %v2455_v32  ;;  %v1207_v52 = vpack.c.bf16 %v1202_v40, %v1201_v38  ;;  %v898_v61 = vperm.slane %v890_v56, 0  ;;  %v2460_v23 = vld [vmem:[%s3292_s4 + $0x110] sm:$0xff] }
  0xfc   : > { %v937_v37 = vpack.c.bf16 %v932_v29, %v931_v28  ;;  %v917_v47 = vpack.c.bf16 %v912_v34, %v911_v33  ;;  %v1208_v26 = vpack.c.bf16 %v1204_v19, %v1203_v14  ;;  %1753 = vmatpush.bf16.msra.mxu2 %v2460_v23  ;;  %v3118_v27 = vsel %vm2931_vm2, 0.0, %v877_v9 }
  0xfd   : > { %v1089_v48 = vpack.c.bf16 %v1084_v36, %v1083_v35  ;;  %v1086_v8 = vmul.f32 %v898_v61, %v2944_v18  ;;  %v1480_v28 = vrot.slane %v3118_v27, 1  ;;  %v1291_v29 = vmul.f32 %v2925_v10, %v2936_v16 }
  0xfe   : > { %1449 = vmatpush.bf16.msrb.mxu3 %v2446_v41  ;;  %v1292_v30 = vmul.f32 %v2925_v10, %v2948_v20  ;;  %v3131_v1 = vperm.slane %v3118_v27, 0  ;;  %v2459_v20 = vld [vmem:[%s3292_s4 + $0x108] sm:$0xff]  ;;  %v1481_v36 = vrot.slane %v3118_v27, 2  ;;  %v1293_v38 = vmul.f32 %v2925_v10, %v2981_v44  ;;  %v2458_v44 = vld [vmem:[%s3292_s4 + $0x100] sm:$0xff] }
  0xff   : > { %1567 = vmatpush.bf16.msrb.mxu0 %v2450_v42  ;;  %1661 = vmatpush.bf16.msrb.mxu1 %v2454_v49  ;;  %v3128_v31 = vperm.slane %v1480_v28, 0  ;;  %v1294_v40 = vmul.f32 %v2925_v10, %v2983_v45  ;;  %v1483_v45 = vrot.slane %v3118_v27, 4  ;;  %v1296_v56 = vmul.f32 %v2925_v10, %v3006_v58 }
 0x100   : > { %v1503_v9 = vmul.f32 %v3131_v1, %v2940_v17  ;;  %v1299_v32 = vpack.c.bf16 %v1292_v30, %v1291_v29  ;;  %v1597_v33 = vmul.f32 %v2925_v10, %v3131_v1  ;;  %1754 = vmatpush.bf16.msra.mxu2 %v2459_v20  ;;  %v1489_v41 = vperm.slane %v1481_v36, 0 }
 0x101   : > { %2157 = vmatmul.msk.bf16.gmra.mxu2 %vm972_vm3, %v936_v55  ;;  %v889_v55 = vrot.slane %v2920_v5, 6  ;;  %v914_v5 = vmul.f32 %v898_v61, %v2940_v17  ;;  %v1504_v15 = vmul.f32 %v3128_v31, %v2940_v17  ;;  %v1598_v16 = vmul.f32 %v2925_v10, %v3128_v31 }
 0x102   : > { %v1505_v39 = vmul.f32 %v1489_v41, %v2940_v17  ;;  %v1486_v58 = vrot.slane %v3118_v27, 7  ;;  %v1693_v30 = vmul.f32 %v1489_v41, %v2944_v18 }
 0x103   : > { %v897_v57 = vperm.slane %v889_v55, 0  ;;  %v1511_v34 = vpack.c.bf16 %v1504_v15, %v1503_v9  ;;  %v1605_v35 = vpack.c.bf16 %v1598_v16, %v1597_v33  ;;  %v1295_v55 = vmul.f32 %v2925_v10, %v2985_v46 }
 0x104   : > { %2177 = vmatmul.msk.bf16.gmra.mxu3 %vm972_vm3, %v916_v63  ;;  %2205 = vmatmul.msk.bf16.gmra.mxu0 %vm972_vm3, %v1088_v0  ;;  %v934_v0 = vmul.f32 %v2925_v10, %v898_v61  ;;  %v1485_v46 = vrot.slane %v3118_v27, 6  ;;  %v1494_v14 = vperm.slane %v1486_v58, 0 }
 0x105   : > { %2233 = vmatmul.msk.bf16.gmra.mxu1 %vm972_vm3, %v1206_v6  ;;  %v933_v63 = vmul.f32 %v2925_v10, %v897_v57  ;;  %v913_v6 = vmul.f32 %v897_v57, %v2940_v17  ;;  %v1085_v7 = vmul.f32 %v897_v57, %v2944_v18  ;;  %1755 = vmatpush.bf16.msra.mxu2 %v2458_v44  ;;  %v1491_v57 = vperm.slane %v1483_v45, 0 }
 0x106   : > { %v1510_v62 = vmul.f32 %v1494_v14, %v2940_v17  ;;  %v1604_v23 = vmul.f32 %v2925_v10, %v1494_v14 }
 0x107   : > { %v938_v13 = vpack.c.bf16 %v934_v0, %v933_v63  ;;  %v918_v24 = vpack.c.bf16 %v914_v5, %v913_v6  ;;  %v1090_v25 = vpack.c.bf16 %v1086_v8, %v1085_v7  ;;  %v1507_v53 = vmul.f32 %v1491_v57, %v2940_v17 }
 0x108   : > { %v1601_v63 = vmul.f32 %v2925_v10, %v1491_v57  ;;  %v1297_v7 = vmul.f32 %v2925_v10, %v3022_v2  ;;  %v1298_v8 = vmul.f32 %v2925_v10, %v3026_v3  ;;  %v1692_v2 = vmul.f32 %v3128_v31, %v2944_v18 }
 0x111   : > { %2158 = vmatmul.msk.bf16.gmra.mxu2 %vm972_vm3, %v937_v37  ;;  %v1482_v37 = vrot.slane %v3118_v27, 3 }
 0x113   : > { %v1490_v42 = vperm.slane %v1482_v37, 0 }
 0x114   : > { %2178 = vmatmul.msk.bf16.gmra.mxu3 %vm972_vm3, %v917_v47  ;;  %2206 = vmatmul.msk.bf16.gmra.mxu0 %vm972_vm3, %v1089_v48  ;;  %v1599_v47 = vmul.f32 %v2925_v10, %v1489_v41  ;;  %v1695_v41 = vmul.f32 %v1491_v57, %v2944_v18 }
 0x115   : > { %2234 = vmatmul.msk.bf16.gmra.mxu1 %vm972_vm3, %v1207_v52  ;;  %v1506_v43 = vmul.f32 %v1490_v42, %v2940_v17  ;;  %v1600_v48 = vmul.f32 %v2925_v10, %v1490_v42  ;;  %v1484_v52 = vrot.slane %v3118_v27, 5  ;;  %v1694_v9 = vmul.f32 %v1490_v42, %v2944_v18 }
 0x117   : > { %v1512_v49 = vpack.c.bf16 %v1506_v43, %v1505_v39  ;;  %v1606_v51 = vpack.c.bf16 %v1600_v48, %v1599_v47  ;;  %v1492_v61 = vperm.slane %v1484_v52, 0  ;;  %v1700_v33 = vpack.c.bf16 %v1694_v9, %v1693_v30 }
 0x119   : > { %v1508_v54 = vmul.f32 %v1492_v61, %v2940_v17  ;;  %v1602_v0 = vmul.f32 %v2925_v10, %v1492_v61  ;;  %v1696_v42 = vmul.f32 %v1492_v61, %v2944_v18  ;;  %v1698_v61 = vmul.f32 %v1494_v14, %v2944_v18 }
 0x11b   : > { %v1513_v6 = vpack.c.bf16 %v1508_v54, %v1507_v53  ;;  %v1607_v5 = vpack.c.bf16 %v1602_v0, %v1601_v63  ;;  %v1701_v44 = vpack.c.bf16 %v1696_v42, %v1695_v41 }
 0x121   : > { %2159 = vmatmul.msk.bf16.gmra.mxu2 %vm972_vm3, %v938_v13  ;;  %v1493_v13 = vperm.slane %v1485_v46, 0 }
 0x123   : > { %v1509_v60 = vmul.f32 %v1493_v13, %v2940_v17  ;;  %v1603_v19 = vmul.f32 %v2925_v10, %v1493_v13  ;;  %v1691_v17 = vmul.f32 %v3131_v1, %v2944_v18  ;;  %v1697_v57 = vmul.f32 %v1493_v13, %v2944_v18 }
 0x124   : > { %2179 = vmatmul.msk.bf16.gmra.mxu3 %vm972_vm3, %v918_v24  ;;  %2207 = vmatmul.msk.bf16.gmra.mxu0 %vm972_vm3, %v1090_v25 }
 0x125   : > { %2235 = vmatmul.msk.bf16.gmra.mxu1 %vm972_vm3, %v1208_v26  ;;  %v1514_v24 = vpack.c.bf16 %v1510_v62, %v1509_v60  ;;  %v1608_v25 = vpack.c.bf16 %v1604_v23, %v1603_v19  ;;  %v1699_v10 = vpack.c.bf16 %v1692_v2, %v1691_v17  ;;  %v1702_v46 = vpack.c.bf16 %v1698_v61, %v1697_v57  ;;  %v3228_v61 = vld [vmem:[%s3293_s5] ss:$0 sm:$0xff] }
 0x131   : > { %2260 = vmatmul.msk.bf16.vlgmr.msrb.gmra.mxu2 %vm972_vm3, %v1299_v32 }
 0x134   : > { %2288 = vmatmul.msk.bf16.vlgmr.msrb.gmra.mxu3 %vm972_vm3, %v1393_v50  ;;  %2316 = vmatmul.msk.bf16.vlgmr.msrb.gmra.mxu0 %vm972_vm3, %v1511_v34  ;;  %v1300_v50 = vpack.c.bf16 %v1294_v40, %v1293_v38 }
 0x135   : > { %2344 = vmatmul.msk.bf16.vlgmr.msrb.gmra.mxu1 %vm972_vm3, %v1605_v35 }
 0x141   : > { %2261 = vmatmul.msk.bf16.gmra.mxu2 %vm972_vm3, %v1300_v50 }
 0x144   : > { %2289 = vmatmul.msk.bf16.gmra.mxu3 %vm972_vm3, %v1394_v59  ;;  %2317 = vmatmul.msk.bf16.gmra.mxu0 %vm972_vm3, %v1512_v49  ;;  %v1301_v59 = vpack.c.bf16 %v1296_v56, %v1295_v55 }
 0x145   : > { %2345 = vmatmul.msk.bf16.gmra.mxu1 %vm972_vm3, %v1606_v51 }
 0x151   : > { %2262 = vmatmul.msk.bf16.gmra.mxu2 %vm972_vm3, %v1301_v59 }
 0x154   : > { %2290 = vmatmul.msk.bf16.gmra.mxu3 %vm972_vm3, %v1395_v11  ;;  %2318 = vmatmul.msk.bf16.gmra.mxu0 %vm972_vm3, %v1513_v6  ;;  %v1302_v11 = vpack.c.bf16 %v1298_v8, %v1297_v7 }
 0x155   : > { %2346 = vmatmul.msk.bf16.gmra.mxu1 %vm972_vm3, %v1607_v5 }
 0x161   : > { %2263 = vmatmul.msk.bf16.gmra.mxu2 %vm972_vm3, %v1302_v11 }
 0x164   : > { %2291 = vmatmul.msk.bf16.gmra.mxu3 %vm972_vm3, %v1396_v22  ;;  %2319 = vmatmul.msk.bf16.gmra.mxu0 %vm972_vm3, %v1514_v24 }
 0x165   : > { %2347 = vmatmul.msk.bf16.gmra.mxu1 %vm972_vm3, %v1608_v25 }
 0x171   : > { %v1145_v3 = vpop.f32.mrf.mxu0  ;;  %2372 = vmatmul.msk.bf16.vlgmr.msra.gmra.mxu2 %vm972_vm3, %v1699_v10 }
 0x172   : > { %v1263_v26 = vpop.f32.mrf.mxu1 }
 0x174   : > { %v994_v27 = vpop.f32.mrf.mxu2 }
 0x177   : > { %v1059_v28 = vpop.f32.mrf.mxu3 }
 0x178   : > { %v1060_v12 = vadd.f32 %v1059_v28, %v994_v27 }
 0x179   : > { %v1147_v4 = vpop.f32.mrf.mxu0 }
 0x17a   : > { %v1165_v22 = vadd.f32 %v1145_v3, %v1060_v12  ;;  %v1265_v29 = vpop.f32.mrf.mxu1 }
 0x17c   : > { %v996_v15 = vpop.f32.mrf.mxu2  ;;  %v1283_v1 = vadd.f32 %v1263_v26, %v1165_v22 }
 0x17f   : > { %v1061_v32 = vpop.f32.mrf.mxu3 }
 0x180   : > { %v1062_v31 = vadd.f32 %v1061_v32, %v996_v15 }
 0x181   : > { %v1150_v16 = vpop.f32.mrf.mxu0  ;;  %2373 = vmatmul.msk.bf16.gmra.mxu2 %vm972_vm3, %v1700_v33 }
 0x182   : > { %v1166_v20 = vadd.f32 %v1147_v4, %v1062_v31  ;;  %v1268_v34 = vpop.f32.mrf.mxu1 }
 0x184   : > { %v999_v35 = vpop.f32.mrf.mxu2  ;;  %v1284_v36 = vadd.f32 %v1265_v29, %v1166_v20 }
 0x187   : > { %v1064_v37 = vpop.f32.mrf.mxu3 }
 0x188   : > { %v1065_v38 = vadd.f32 %v1064_v37, %v999_v35 }
 0x189   : > { %v1152_v39 = vpop.f32.mrf.mxu0 }
 0x18a   : > { %v1167_v40 = vadd.f32 %v1150_v16, %v1065_v38  ;;  %v1270_v47 = vpop.f32.mrf.mxu1 }
 0x18c   : > { %v1001_v43 = vpop.f32.mrf.mxu2  ;;  %v1285_v50 = vadd.f32 %v1268_v34, %v1167_v40 }
 0x18f   : > { %v1066_v48 = vpop.f32.mrf.mxu3 }
 0x190   : > { %v1067_v49 = vadd.f32 %v1066_v48, %v1001_v43 }
 0x191   : > { %2374 = vmatmul.msk.bf16.gmra.mxu2 %vm972_vm3, %v1701_v44  ;;  %v1155_v55 = vpop.f32.mrf.mxu0 }
 0x192   : > { %v1168_v51 = vadd.f32 %v1152_v39, %v1067_v49  ;;  %v1273_v56 = vpop.f32.mrf.mxu1 }
 0x194   : > { %v1004_v45 = vpop.f32.mrf.mxu2  ;;  %v1286_v52 = vadd.f32 %v1270_v47, %v1168_v51 }
 0x197   : > { %v1069_v53 = vpop.f32.mrf.mxu3 }
 0x198   : > { %v1070_v54 = vadd.f32 %v1069_v53, %v1004_v45 }
 0x199   : > { %v1157_v6 = vpop.f32.mrf.mxu0 }
 0x19a   : > { %v1169_v59 = vadd.f32 %v1155_v55, %v1070_v54  ;;  %v1275_v7 = vpop.f32.mrf.mxu1 }
 0x19c   : > { %v1006_v63 = vpop.f32.mrf.mxu2  ;;  %v1287_v0 = vadd.f32 %v1273_v56, %v1169_v59 }
 0x19f   : > { %v1071_v5 = vpop.f32.mrf.mxu3 }
 0x1a0   : > { %v1072_v58 = vadd.f32 %v1071_v5, %v1006_v63 }
 0x1a1   : > { %2375 = vmatmul.msk.bf16.gmra.mxu2 %vm972_vm3, %v1702_v46  ;;  %v1160_v23 = vpop.f32.mrf.mxu0 }
 0x1a2   : > { %v1170_v8 = vadd.f32 %v1157_v6, %v1072_v58  ;;  %v1278_v25 = vpop.f32.mrf.mxu1 }
 0x1a4   : > { %v1009_v60 = vpop.f32.mrf.mxu2  ;;  %v1288_v62 = vadd.f32 %v1275_v7, %v1170_v8 }
 0x1a7   : > { %v1074_v11 = vpop.f32.mrf.mxu3 }
 0x1a8   : > { %v1075_v19 = vadd.f32 %v1074_v11, %v1009_v60 }
 0x1a9   : > { %v1162_v29 = vpop.f32.mrf.mxu0 }
 0x1aa   : > { %v1171_v24 = vadd.f32 %v1160_v23, %v1075_v19  ;;  %v3221_v30 = vpop.f32.mrf.mxu1 }
 0x1ac   : > { %v1011_v13 = vpop.f32.mrf.mxu2  ;;  %v1289_v17 = vadd.f32 %v1278_v25, %v1171_v24 }
 0x1af   : > { %v1076_v12 = vpop.f32.mrf.mxu3 }
 0x1b0   : > { %v1077_v7 = vadd.f32 %v1076_v12, %v1011_v13 }
 0x1b1   : > { %v1569_v33 = vpop.f32.mrf.mxu0 }
 0x1b2   : > { %v1663_v31 = vpop.f32.mrf.mxu1 }
 0x1b4   : > { %v1357_v18 = vpop.f32.mrf.mxu2 }
 0x1b5   : > { %v1377_v14 = vadd.f32 %v1357_v18, %v1283_v1  ;;  %v1172_v18 = vadd.f32 %v1162_v29, %v1077_v7 }
 0x1b7   : > { %v1451_v9 = vpop.f32.mrf.mxu3 }
 0x1b8   : > { %v1471_v44 = vadd.f32 %v1451_v9, %v1377_v14 }
 0x1b9   : > { %v1571_v34 = vpop.f32.mrf.mxu0 }
 0x1ba   : > { %v1589_v51 = vadd.f32 %v1569_v33, %v1471_v44 }
 0x1bc   : > { %v1359_v2 = vpop.f32.mrf.mxu2  ;;  %v1683_v54 = vadd.f32 %v1663_v31, %v1589_v51 }
 0x1bd   : > { %v1378_v10 = vadd.f32 %v1359_v2, %v1284_v36  ;;  %v1665_v36 = vpop.f32.mrf.mxu1 }
 0x1bf   : > { %v1453_v16 = vpop.f32.mrf.mxu3 }
 0x1c0   : > { %v1472_v53 = vadd.f32 %v1453_v16, %v1378_v10 }
 0x1c1   : > { %v1574_v38 = vpop.f32.mrf.mxu0 }
 0x1c2   : > { %v1590_v63 = vadd.f32 %v1571_v34, %v1472_v53 }
 0x1c4   : > { %v1362_v3 = vpop.f32.mrf.mxu2  ;;  %v1684_v60 = vadd.f32 %v1665_v36, %v1590_v63 }
 0x1c5   : > { %v1379_v26 = vadd.f32 %v1362_v3, %v1285_v50  ;;  %v1668_v39 = vpop.f32.mrf.mxu1 }
 0x1c7   : > { %v1456_v37 = vpop.f32.mrf.mxu3 }
 0x1c8   : > { %v1473_v8 = vadd.f32 %v1456_v37, %v1379_v26 }
 0x1c9   : > { %v1576_v43 = vpop.f32.mrf.mxu0 }
 0x1ca   : > { %v1591_v14 = vadd.f32 %v1574_v38, %v1473_v8 }
 0x1cc   : > { %v1364_v27 = vpop.f32.mrf.mxu2 }
 0x1cd   : > { %v3219_v28 = vadd.f32 %v1364_v27, %v1286_v52  ;;  %v3223_v50 = vpop.f32.mrf.mxu1 }
 0x1cf   : > { %v1458_v41 = vpop.f32.mrf.mxu3 }
 0x1d0   : > { %v1474_v9 = vadd.f32 %v1458_v41, %v3219_v28 }
 0x1d1   : > { %v1579_v49 = vpop.f32.mrf.mxu0 }
 0x1d2   : > { %v1592_v37 = vadd.f32 %v1576_v43, %v1474_v9 }
 0x1d4   : > { %v1367_v4 = vpop.f32.mrf.mxu2 }
 0x1d5   : > { %v1381_v22 = vadd.f32 %v1367_v4, %v1287_v0  ;;  %v1673_v45 = vpop.f32.mrf.mxu1 }
 0x1d7   : > { %v1461_v47 = vpop.f32.mrf.mxu3 }
 0x1d8   : > { %v1475_v52 = vadd.f32 %v1461_v47, %v1381_v22 }
 0x1d9   : > { %v1581_v0 = vpop.f32.mrf.mxu0 }
 0x1da   : > { %v1593_v59 = vadd.f32 %v1579_v49, %v1475_v52 }
 0x1dc   : > { %v1369_v15 = vpop.f32.mrf.mxu2  ;;  %v1687_v46 = vadd.f32 %v1673_v45, %v1593_v59 }
 0x1dd   : > { %v1382_v32 = vadd.f32 %v1369_v15, %v1288_v62  ;;  %v1675_v11 = vpop.f32.mrf.mxu1  ;;  %v1290_v15 = vadd.f32 %v3221_v30, %v1172_v18 }
 0x1df   : > { %v1463_v55 = vpop.f32.mrf.mxu3 }
 0x1e0   : > { %v1476_v6 = vadd.f32 %v1463_v55, %v1382_v32  ;;  %v1685_v32 = vadd.f32 %v1668_v39, %v1591_v14 }
 0x1e1   : > { %v1584_v12 = vpop.f32.mrf.mxu0 }
 0x1e2   : > { %v1594_v23 = vadd.f32 %v1581_v0, %v1476_v6 }
 0x1e4   : > { %v1372_v1 = vpop.f32.mrf.mxu2  ;;  %v1688_v26 = vadd.f32 %v1675_v11, %v1594_v23 }
 0x1e5   : > { %v1383_v20 = vadd.f32 %v1372_v1, %v1289_v17  ;;  %v1678_v34 = vpop.f32.mrf.mxu1 }
 0x1e7   : > { %v1466_v19 = vpop.f32.mrf.mxu3 }
 0x1e8   : > { %v1477_v10 = vadd.f32 %v1466_v19, %v1383_v20 }
 0x1ea   : > { %v1595_v29 = vadd.f32 %v1584_v12, %v1477_v10  ;;  %v2577_v10 = vmov 0  }
 0x1eb   : > { %2504 = vset.pattern.permute.xlu1 %v2577_v10 }
 0x1ec   : > { %v1374_v35 = vpop.f32.mrf.mxu2 }
 0x1ed   : > { %v1384_v31 = vadd.f32 %v1374_v35, %v1290_v15  ;;  %v1686_v35 = vadd.f32 %v3223_v50, %v1592_v37  ;;  %v1680_v53 = vpop.f32.mrf.mxu1 }
 0x1ef   : > { %v1468_v36 = vpop.f32.mrf.mxu3 }
 0x1f4   : > { %v1757_v40 = vpop.f32.mrf.mxu2 }
 0x1f5   : > { %v1777_v57 = vadd.f32 %v1757_v40, %v1683_v54  ;;  %v1689_v40 = vadd.f32 %v1678_v34, %v1595_v29 }
 0x1f7   : > { %v1789_v5 = vadd.f32 %v3228_v61, %v1777_v57 }
 0x1f9   : > { %v1797_v24 = vmax.f32 %v1789_v5, 0.0 }
 0x1fb   : > { %v1806_v3 = vsel %vm1805_vm4, %v1797_v24, -inf }
 0x1fc   : > { %v1759_v42 = vpop.f32.mrf.mxu2 }
 0x1fd   : > { %v1778_v25 = vadd.f32 %v1759_v42, %v1684_v60  ;;  %v1478_v42 = vadd.f32 %v1468_v36, %v1384_v31 }
 0x1ff   : > { %v1790_v27 = vadd.f32 %v3228_v61, %v1778_v25 }
 0x201   : > { %v1798_v16 = vmax.f32 %v1790_v27, 0.0 }
 0x203   : > { %v1807_v47 = vsel %vm1805_vm4, %v1798_v16, -inf }
 0x204   : > { %v1762_v48 = vpop.f32.mrf.mxu2 }
 0x205   : > { %v1779_v1 = vadd.f32 %v1762_v48, %v1685_v32  ;;  %v1586_v48 = vpop.f32.mrf.mxu0 }
 0x206   : > { %v1596_v51 = vadd.f32 %v1586_v48, %v1478_v42 }
 0x207   : > { %v1791_v28 = vadd.f32 %v3228_v61, %v1779_v1 }
 0x208   : > { %v1690_v63 = vadd.f32 %v1680_v53, %v1596_v51 }
 0x209   : > { %v1799_v45 = vmax.f32 %v1791_v28, 0.0 }
 0x20b   : > { %v1808_v54 = vsel %vm1805_vm4, %v1799_v45, -inf }
 0x20c   : > { %v1764_v56 = vpop.f32.mrf.mxu2 }
 0x20d   : > { %v1780_v52 = vadd.f32 %v1764_v56, %v1686_v35 }
 0x20f   : > { %v1792_v59 = vadd.f32 %v3228_v61, %v1780_v52 }
 0x211   : > { %v1800_v5 = vmax.f32 %v1792_v59, 0.0 }
 0x213   : > { %v1809_v56 = vsel %vm1805_vm4, %v1800_v5, -inf }
 0x214   : > { %v1767_v58 = vpop.f32.mrf.mxu2 }
 0x215   : > { %v1781_v62 = vadd.f32 %v1767_v58, %v1687_v46 }
 0x217   : > { %v1793_v17 = vadd.f32 %v3228_v61, %v1781_v62 }
 0x219   : > { %v1801_v2 = vmax.f32 %v1793_v17, 0.0  ;;  %v1827_v17 = vld [vmem:[%s3294_s6] sm:$0x3] }
 0x21b   : > { %v1810_v13 = vsel %vm1805_vm4, %v1801_v2, -inf  ;;  %v2508_v2 = vld [vmem:[%s3295_s7] ss:$0 sm:$0xff] }
 0x21c   : > { %v1811_v4 = vmax.f32 %v1806_v3, %v1810_v13  ;;  %v1769_v22 = vpop.f32.mrf.mxu2 }
 0x21d   : > { %v1782_v33 = vadd.f32 %v1769_v22, %v1688_v26  ;;  %v1849_v26 = vand.u32 127, %v859_v21 }
 0x21f   : > { %v1794_v20 = vadd.f32 %v3228_v61, %v1782_v33 }
 0x221   : > { %v1802_v38 = vmax.f32 %v1794_v20, 0.0 }
 0x223   : > { %v1812_v30 = vsel %vm1805_vm4, %v1802_v38, -inf }
 0x224   : > { %v1813_v39 = vmax.f32 %v1807_v47, %v1812_v30  ;;  %v1772_v41 = vpop.f32.mrf.mxu2 }
 0x225   : > { %v1783_v44 = vadd.f32 %v1772_v41, %v1689_v40 }
 0x226   : > { %v1818_v49 = vmax.f32 %v1811_v4, %v1813_v39 }
 0x227   : > { %v1795_v43 = vadd.f32 %v3228_v61, %v1783_v44 }
 0x229   : > { %v1803_v55 = vmax.f32 %v1795_v43, 0.0 }
 0x22b   : > { %v1814_v57 = vsel %vm1805_vm4, %v1803_v55, -inf }
 0x22c   : > { %v1815_v0 = vmax.f32 %v1808_v54, %v1814_v57  ;;  %v1774_v6 = vpop.f32.mrf.mxu2 }
 0x22d   : > { %v1784_v50 = vadd.f32 %v1774_v6, %v1690_v63 }
 0x22f   : > { %v1796_v46 = vadd.f32 %v3228_v61, %v1784_v50 }
 0x231   : > { %v1804_v58 = vmax.f32 %v1796_v46, 0.0 }
 0x233   : > { %v1816_v7 = vsel %vm1805_vm4, %v1804_v58, -inf }
 0x234   : > { %v1817_v8 = vmax.f32 %v1809_v56, %v1816_v7 }
 0x236   : > { %v1819_v60 = vmax.f32 %v1815_v0, %v1817_v8 }
 0x238   : > { %v1820_v62 = vmax.f32 %v1818_v49, %v1819_v60 }
 0x23a   : > { %v1821_v11 = vrot.slane %v1820_v62, 4 }
 0x23c   : > { %v1822_v19 = vmax.f32 %v1820_v62, %v1821_v11 }
 0x23e   : > { %v1823_v23 = vrot.slane %v1822_v19, 2 }
 0x240   : > { %v1824_v24 = vmax.f32 %v1822_v19, %v1823_v23 }
 0x242   : > { %v1825_v25 = vrot.slane %v1824_v24, 1 }
 0x244   : > { %v1826_v61 = vmax.f32 %v1824_v24, %v1825_v25 }
 0x246   : > { %v1828_v18 = vmul.f32 %v1827_v17, %v1826_v61 }
 0x248   : > { %v1830_v14 = vsel %vm1829_vm5, %v1828_v18, 0.0 }
 0x249   : > { %1831 = vadd.xlane.f32.xlu0 %v1830_v14 }
 0x25d   : > { %1840 = vperm.xlu0 %2503, %v2508_v2  }
 0x265   : > { %2505 = vset.pattern.permute.xlu0 %v2577_v10 }
 0x2bc   : > { %v1832_v3 = vpop.xlane.xlu0 %1831 }
 0x2cf   : > { %v1841_v27 = vpop.permute.xlu0 %1840 }
 0x2d0   : > { %v1843_v13 = vadd.f32 %v1841_v27, %v1832_v3 }
 0x2d2   : > { %1846 = vperm.xlu1 %2504, %v1843_v13  }
 0x344   : > { %v1847_v12 = vpop.permute.xlu1 %1846 }
 0x345   : > { %v1850_v4 = vperm.slane %v1847_v12, %v1849_v26 }
 0x347   : > { %1853 = vst.msk [vmem:[%s312_s12] sm:$0x1] %vm1852_vm6, %v1850_v4 }
 0x348   : > { %2540 = shalt.err (!%p2537_p3)
}
 0x349   : > { %2463 = dma.vmem_to_hbm [thread:$0]  (%p2661_p5), %s1866_s20, 16, %s1868_s21, %s1855_s23  }
 0x34a PF: > { %p2469_p4 = scmp.ge.s32.totalorder %s2575_s30, 2  ;;  %s1879_s17 = sand.u32 1, %s2563_s27  }
 0x34b   : > { %s1880_s19 = scalar_lea.sflag [#allocation3], %s1879_s17 }
 0x34c   : > { %p2466_p7 = pnand %p2469_p4, %p2665_p6 }
 0x34e   : > { %p2467_p8 = pneg %p2466_p7 }
 0x350   : > { %2558 = dma.done.wait (%p2467_p8), %s1880_s19, 16  }
 0x351   : > { %2560 = vsyncadd (%p2467_p8), %s1880_s19, 4294967280  ;;  %p18_p9 = scmp.ge.s32.totalorder %s2648_s11, 4   ;;  %s3303_s27 = smov %s2567_s28 }
 0x352   : > { %s3304_s28 = smov %s2571_s29  ;;  %s3305_s29 = smov %s2659_s14 }
 0x353   : > { %s3306_s30 = smov %s2648_s11  ;;  %20 = sbr.rel (!%p18_p9) target bundleno = 3 (0x3), region = 98 }
 0x358   :  { %1885 = vsyncpa [#allocation3], 1 }
 0x359   :  { %1887 = vsyncpa [#allocation3 + $0x1], 1 }

</bundles_post_ra>
